<compile_context>
chip_gen: v7x
topology: tpu7x:2x2x1
jax: 0.10.0
libtpu: 0.0.40
codegen_flags: <defaults>
</compile_context>

<pallas_src>
import jax
import jax.numpy as jnp
from jax.experimental import pallas as pl
from jax.experimental.pallas import tpu as pltpu

_INV_SQRT2 = 0.7071067811865476
_LN_EPS = 1e-12


def _round_up(x, m):
    return (x + m - 1) // m * m


def _gelu_exact(x):
    # transformers ACT2FN['gelu'] is the exact erf-based gelu.
    return 0.5 * x * (1.0 + jax.lax.erf(x * _INV_SQRT2))


def bert_output_adapters_kernel(
    x_ref,      # (TM, I)  hidden_states tile (compute dtype, e.g. bf16)
    res_ref,    # (TM, H)  input_tensor (residual) tile (compute dtype)
    wd_ref,     # (I, H)   dense weight (pre-transposed), resident
    wdn_ref,    # (H, Ap)  adapter down_project weight (lane-padded)
    wup_ref,    # (Ap, H)  adapter up_project weight (row-padded)
    bdn_ref,    # (1, Ap)  adapter down_project bias (f32, lane-padded)
    sp_ref,     # (4, H)   f32 pack: [dense bias, up bias, LN gamma, LN beta]
    o_ref,      # (TM, H)  output tile
):
    sp = sp_ref[...].astype(jnp.float32)
    bd = sp[0:1, :]
    bup = sp[1:2, :]
    gamma = sp[2:3, :]
    beta = sp[3:4, :]
    bdn = bdn_ref[...].astype(jnp.float32)

    # dense: Linear(intermediate -> hidden). bf16 operands, f32 accumulation.
    h = jnp.dot(x_ref[...], wd_ref[...],
                preferred_element_type=jnp.float32) + bd

    # dropout: identity in eval / inference mode

    # adapter: h + up_project(gelu(down_project(h)))
    d = jnp.dot(h.astype(wdn_ref.dtype), wdn_ref[...],
                preferred_element_type=jnp.float32) + bdn
    d = _gelu_exact(d)
    u = jnp.dot(d.astype(wup_ref.dtype), wup_ref[...],
                preferred_element_type=jnp.float32) + bup
    a = h + u

    # residual add + one-pass LayerNorm over the last axis (f32 math).
    z = a + res_ref[...].astype(jnp.float32)
    inv_h = 1.0 / z.shape[-1]
    s1 = jnp.sum(z, axis=-1, keepdims=True)
    s2 = jnp.sum(z * z, axis=-1, keepdims=True)
    mean = s1 * inv_h
    var = jnp.maximum(s2 * inv_h - mean * mean, 0.0)
    inv = jax.lax.rsqrt(var + _LN_EPS)
    y = (z - mean) * inv * gamma + beta

    o_ref[...] = y.astype(o_ref.dtype)


def bert_output_with_adapters(hidden_states, input_tensor, params, *,
                              tm=None, compute_dtype=jnp.bfloat16,
                              out_dtype=None):
    """hidden_states: (B, S, I), input_tensor: (B, S, H) -> (B, S, H)."""
    B, S, I = hidden_states.shape
    H = input_tensor.shape[-1]
    M = B * S
    out_dtype = hidden_states.dtype if out_dtype is None else out_dtype

    # --- adapter-width padding to a multiple of 128 lanes (numerically exact:
    #     gelu(0) = 0 and zero up-rows contribute nothing) ---
    w_down = params["w_down"]
    b_down = params["b_down"]
    w_up = params["w_up"]
    A = w_down.shape[-1]
    Ap = max(128, _round_up(A, 128))
    if Ap != A:
        w_down = jnp.pad(w_down, ((0, 0), (0, Ap - A)))
        b_down = jnp.pad(b_down, ((0, 0), (0, Ap - A)))
        w_up = jnp.pad(w_up, ((0, Ap - A), (0, 0)))

    # --- dtype prep: bf16 (or given compute dtype) operands for the MXU,
    #     small params stay f32 and are packed into one (4, H) array ---
    x2 = hidden_states.reshape(M, I).astype(compute_dtype)
    r2 = input_tensor.reshape(M, H).astype(compute_dtype)
    wd = params["w_dense"].astype(compute_dtype)
    wdn = w_down.astype(compute_dtype)
    wup = w_up.astype(compute_dtype)
    bdn = b_down.astype(jnp.float32).reshape(1, Ap)
    small = jnp.concatenate([
        params["b_dense"].reshape(1, H),
        params["b_up"].reshape(1, H),
        params["ln_gamma"].reshape(1, H),
        params["ln_beta"].reshape(1, H),
    ], axis=0).astype(jnp.float32)                      # (4, H)

    act_bytes = jnp.dtype(compute_dtype).itemsize
    out_bytes = jnp.dtype(out_dtype).itemsize

    # --- chip-aware VMEM budget ---
    try:
        vmem_cap = int(pltpu.get_tpu_info().vmem_capacity_bytes)
    except Exception:
        vmem_cap = 64 * 1024 * 1024                     # conservative (v7x)
    budget = vmem_cap - 8 * 1024 * 1024

    # --- row tiling: dtype-aware default, >=2 grid steps, fits VMEM ---
    if tm is None:
        if act_bytes <= 2:
            tm = 1024 if vmem_cap >= 96 * 1024 * 1024 else 512
        else:
            tm = 256
    tm = max(8, min(tm, _round_up(M, 8)))
    if M > 8:  # ensure >=2 grid steps so both v7x TensorCores get work
        tm = min(tm, _round_up((M + 1) // 2, 8))

    def _vmem_need(tm_):
        stream = (2 * tm_ * I * act_bytes          # x tile, double buffered
                  + 2 * tm_ * H * act_bytes        # residual tile
                  + 2 * tm_ * H * out_bytes)       # output tile
        weights = 2 * (I * H + H * Ap + Ap * H) * act_bytes   # worst case 2 bufs
        smalls = 2 * (8 * H + 8 * Ap) * 4
        scratch = 4 * tm_ * (2 * H + Ap) * 4       # f32 intermediates (h, z, d, u)
        return stream + weights + smalls + scratch

    while tm > 8 and _vmem_need(tm) > budget:
        tm = max(8, _round_up(tm // 2, 8))
    m_pad = _round_up(M, tm)
    if m_pad != M:
        x2 = jnp.pad(x2, ((0, m_pad - M), (0, 0)))
        r2 = jnp.pad(r2, ((0, m_pad - M), (0, 0)))
    grid = (m_pad // tm,)

    vmem_limit = max(32 * 1024 * 1024,
                     min(int(1.2 * _vmem_need(tm)) + (4 << 20), budget))

    def _build(use_buffered):
        def const_spec(shape):
            if use_buffered:
                return pl.BlockSpec(shape, lambda i: (0, 0),
                                    pipeline_mode=pl.Buffered(1))
            return pl.BlockSpec(shape, lambda i: (0, 0))

        def row_spec(shape):
            return pl.BlockSpec(shape, lambda i: (i, 0))

        return pl.pallas_call(
            bert_output_adapters_kernel,
            out_shape=jax.ShapeDtypeStruct((m_pad, H), out_dtype),
            grid=grid,
            in_specs=[
                row_spec((tm, I)),        # x tile (pipelined per grid step)
                row_spec((tm, H)),        # residual tile
                const_spec((I, H)),       # dense W (resident)
                const_spec((H, Ap)),      # down W (resident)
                const_spec((Ap, H)),      # up W (resident)
                const_spec((1, Ap)),      # down bias
                const_spec((4, H)),       # packed small params
            ],
            out_specs=row_spec((tm, H)),
            compiler_params=pltpu.CompilerParams(
                dimension_semantics=("parallel",),
                vmem_limit_bytes=vmem_limit,
            ),
        )

    args = (x2, r2, wd, wdn, wup, bdn, small)
    want_buffered = hasattr(pl, "Buffered")
    try:
        out = _build(want_buffered)(*args)
    except Exception:
        if not want_buffered:
            raise
        # pipeline_mode / Buffered(1) not supported here -> default buffering.
        out = _build(False)(*args)

    return out[:M].reshape(B, S, H)


def make_params(key, intermediate_size, hidden_size, adapter_size,
                dtype=jnp.float32):
    k1, k2, k3 = jax.random.split(key, 3)
    adapter_std = 0.0002   # DEFAULT_ADAPTER_INITIALIZER_RANGE
    dense_std = 0.02       # BERT initializer_range
    return {
        # stored as (in, out) = PyTorch weight.T
        "w_dense": (dense_std * jax.random.normal(k1, (intermediate_size, hidden_size))).astype(dtype),
        "b_dense": jnp.zeros((1, hidden_size), dtype),
        "w_down": (adapter_std * jax.random.normal(k2, (hidden_size, adapter_size))).astype(dtype),
        "b_down": jnp.zeros((1, adapter_size), dtype),
        "w_up": (adapter_std * jax.random.normal(k3, (adapter_size, hidden_size))).astype(dtype),
        "b_up": jnp.zeros((1, hidden_size), dtype),
        "ln_gamma": jnp.ones((1, hidden_size), dtype),
        "ln_beta": jnp.zeros((1, hidden_size), dtype),
    }


def _reference(hidden_states, input_tensor, p, compute_dtype=None):
    """Pure-JAX reference. If compute_dtype is given, mirrors the kernel's
    bf16-operand / f32-accumulation matmul path."""
    if compute_dtype is not None:
        x = hidden_states.astype(compute_dtype)
        r = input_tensor.astype(compute_dtype).astype(jnp.float32)
        wd = p["w_dense"].astype(compute_dtype)
        wdn = p["w_down"].astype(compute_dtype)
        wup = p["w_up"].astype(compute_dtype)
    else:
        x, r = hidden_states, input_tensor
        wd, wdn, wup = p["w_dense"], p["w_down"], p["w_up"]
    h = jnp.dot(x, wd, preferred_element_type=jnp.float32) + p["b_dense"]
    d = jax.nn.gelu(
        jnp.dot(h.astype(wdn.dtype), wdn, preferred_element_type=jnp.float32)
        + p["b_down"], approximate=False)
    u = jnp.dot(d.astype(wup.dtype), wup,
                preferred_element_type=jnp.float32) + p["b_up"]
    z = h + u + r
    mean = jnp.mean(z, axis=-1, keepdims=True)
    var = jnp.mean((z - mean) ** 2, axis=-1, keepdims=True)
    return (z - mean) * jax.lax.rsqrt(var + _LN_EPS) * p["ln_gamma"] + p["ln_beta"]


if __name__ == "__main__":
    B, S = 2, 8
    INTERMEDIATE, HIDDEN, ADAPTER = 256, 128, 64

    key = jax.random.PRNGKey(0)
    kx, kr, kp = jax.random.split(key, 3)

    hidden_states = jax.random.normal(kx, (B, S, INTERMEDIATE), jnp.float32)
    input_tensor = jax.random.normal(kr, (B, S, HIDDEN), jnp.float32)
    params = make_params(kp, INTERMEDIATE, HIDDEN, ADAPTER)

    out = bert_output_with_adapters(hidden_states, input_tensor, params)
    out = jax.block_until_ready(out)

    assert out.shape == (B, S, HIDDEN)
    assert out.dtype == hidden_states.dtype

    # Tight check against a reference that mirrors the bf16 operand cast,
    # plus a looser sanity check against the full-f32 reference.
    ref_matched = _reference(hidden_states, input_tensor, params,
                             compute_dtype=jnp.bfloat16)
    ref_f32 = _reference(hidden_states, input_tensor, params)
    assert jnp.allclose(out, ref_matched, atol=1e-2, rtol=1e-2), \
        "mismatch vs bf16-matched reference"
    assert jnp.allclose(out, ref_f32, atol=5e-2, rtol=5e-2), \
        "mismatch vs f32 reference"

    print("KERNEL_OK")
</pallas_src>

<mosaic_0001>
module attributes {stable_mosaic.version = 11 : i64} {
  func.func @bert_output_adapters_kernel(%arg0: i32, %arg1: memref<8x256xbf16, #tpu.memory_space<vmem>>, %arg2: memref<8x128xbf16, #tpu.memory_space<vmem>>, %arg3: memref<256x128xbf16, #tpu.memory_space<vmem>>, %arg4: memref<128x128xbf16, #tpu.memory_space<vmem>>, %arg5: memref<128x128xbf16, #tpu.memory_space<vmem>>, %arg6: memref<1x128xf32, #tpu.memory_space<vmem>>, %arg7: memref<4x128xf32, #tpu.memory_space<vmem>>, %arg8: memref<8x128xf32, #tpu.memory_space<vmem>>) attributes {dimension_semantics = [#tpu.dimension_semantics<parallel>], iteration_bounds = array<i64: 2>, scalar_prefetch = 0 : i64, scratch_operands = 0 : i64, tpu.core_type = #tpu.core_type<tc>, window_params = [{transform_indices = @transform_0, window_bounds = array<i64: 8, 256>}, {transform_indices = @transform_1, window_bounds = array<i64: 8, 128>}, {pipeline_mode = #tpu.pipeline_mode<synchronous>, transform_indices = @transform_2, window_bounds = array<i64: 256, 128>}, {pipeline_mode = #tpu.pipeline_mode<synchronous>, transform_indices = @transform_3, window_bounds = array<i64: 128, 128>}, {pipeline_mode = #tpu.pipeline_mode<synchronous>, transform_indices = @transform_4, window_bounds = array<i64: 128, 128>}, {pipeline_mode = #tpu.pipeline_mode<synchronous>, transform_indices = @transform_5, window_bounds = array<i64: 1, 128>}, {pipeline_mode = #tpu.pipeline_mode<synchronous>, transform_indices = @transform_6, window_bounds = array<i64: 4, 128>}, {transform_indices = @transform_7, window_bounds = array<i64: 8, 128>}]} {
    %c0 = arith.constant 0 : index
    %c0_0 = arith.constant 0 : index
    %0 = vector.load %arg7[%c0, %c0_0] : memref<4x128xf32, #tpu.memory_space<vmem>>, vector<4x128xf32>
    %1 = vector.extract_strided_slice %0 {offsets = [0, 0], sizes = [1, 128], strides = [1, 1]} : vector<4x128xf32> to vector<1x128xf32>
    %2 = vector.extract_strided_slice %0 {offsets = [1, 0], sizes = [1, 128], strides = [1, 1]} : vector<4x128xf32> to vector<1x128xf32>
    %3 = vector.extract_strided_slice %0 {offsets = [2, 0], sizes = [1, 128], strides = [1, 1]} : vector<4x128xf32> to vector<1x128xf32>
    %4 = vector.extract_strided_slice %0 {offsets = [3, 0], sizes = [1, 128], strides = [1, 1]} : vector<4x128xf32> to vector<1x128xf32>
    %c0_1 = arith.constant 0 : index
    %c0_2 = arith.constant 0 : index
    %5 = vector.load %arg6[%c0_1, %c0_2] : memref<1x128xf32, #tpu.memory_space<vmem>>, vector<1x128xf32>
    %c0_3 = arith.constant 0 : index
    %c0_4 = arith.constant 0 : index
    %6 = vector.load %arg1[%c0_3, %c0_4] : memref<8x256xbf16, #tpu.memory_space<vmem>>, vector<8x256xbf16>
    %c0_5 = arith.constant 0 : index
    %c0_6 = arith.constant 0 : index
    %7 = vector.load %arg3[%c0_5, %c0_6] : memref<256x128xbf16, #tpu.memory_space<vmem>>, vector<256x128xbf16>
    %cst = arith.constant dense<0.000000e+00> : vector<8x128xf32>
    %8 = tpu.matmul %6, %7, %cst {dimension_numbers = #tpu.dot_dimension_numbers<[1], [0], [0], [1], [0, 0, 1, 1], [], []>} : vector<8x256xbf16>, vector<256x128xbf16>, vector<8x128xf32> -> vector<8x128xf32>
    %9 = vector.broadcast %1 : vector<1x128xf32> to vector<8x128xf32>
    %10 = arith.addf %8, %9 : vector<8x128xf32>
    %11 = arith.truncf %10 : vector<8x128xf32> to vector<8x128xbf16>
    %c0_7 = arith.constant 0 : index
    %c0_8 = arith.constant 0 : index
    %12 = vector.load %arg4[%c0_7, %c0_8] : memref<128x128xbf16, #tpu.memory_space<vmem>>, vector<128x128xbf16>
    %cst_9 = arith.constant dense<0.000000e+00> : vector<8x128xf32>
    %13 = tpu.matmul %11, %12, %cst_9 {dimension_numbers = #tpu.dot_dimension_numbers<[1], [0], [0], [1], [0, 0, 1, 1], [], []>} : vector<8x128xbf16>, vector<128x128xbf16>, vector<8x128xf32> -> vector<8x128xf32>
    %14 = vector.broadcast %5 : vector<1x128xf32> to vector<8x128xf32>
    %15 = arith.addf %13, %14 : vector<8x128xf32>
    %cst_10 = arith.constant 5.000000e-01 : f32
    %16 = vector.broadcast %cst_10 : f32 to vector<8x128xf32>
    %17 = arith.mulf %16, %15 : vector<8x128xf32>
    %cst_11 = arith.constant 0.707106769 : f32
    %18 = vector.broadcast %cst_11 : f32 to vector<8x128xf32>
    %19 = arith.mulf %15, %18 : vector<8x128xf32>
    %20 = math.erf %19 : vector<8x128xf32>
    %cst_12 = arith.constant 1.000000e+00 : f32
    %21 = vector.broadcast %cst_12 : f32 to vector<8x128xf32>
    %22 = arith.addf %21, %20 : vector<8x128xf32>
    %23 = arith.mulf %17, %22 : vector<8x128xf32>
    %24 = arith.truncf %23 : vector<8x128xf32> to vector<8x128xbf16>
    %c0_13 = arith.constant 0 : index
    %c0_14 = arith.constant 0 : index
    %25 = vector.load %arg5[%c0_13, %c0_14] : memref<128x128xbf16, #tpu.memory_space<vmem>>, vector<128x128xbf16>
    %cst_15 = arith.constant dense<0.000000e+00> : vector<8x128xf32>
    %26 = tpu.matmul %24, %25, %cst_15 {dimension_numbers = #tpu.dot_dimension_numbers<[1], [0], [0], [1], [0, 0, 1, 1], [], []>} : vector<8x128xbf16>, vector<128x128xbf16>, vector<8x128xf32> -> vector<8x128xf32>
    %27 = vector.broadcast %2 : vector<1x128xf32> to vector<8x128xf32>
    %28 = arith.addf %26, %27 : vector<8x128xf32>
    %29 = arith.addf %10, %28 : vector<8x128xf32>
    %c0_16 = arith.constant 0 : index
    %c0_17 = arith.constant 0 : index
    %30 = vector.load %arg2[%c0_16, %c0_17] : memref<8x128xbf16, #tpu.memory_space<vmem>>, vector<8x128xbf16>
    %31 = arith.extf %30 : vector<8x128xbf16> to vector<8x128xf32>
    %32 = arith.addf %29, %31 : vector<8x128xf32>
    %cst_18 = arith.constant dense<0.000000e+00> : vector<8xf32>
    %33 = vector.multi_reduction <add>, %32, %cst_18 [1] : vector<8x128xf32> to vector<8xf32>
    %34 = vector.shape_cast %33 : vector<8xf32> to vector<8x1xf32>
    %35 = arith.mulf %32, %32 : vector<8x128xf32>
    %cst_19 = arith.constant dense<0.000000e+00> : vector<8xf32>
    %36 = vector.multi_reduction <add>, %35, %cst_19 [1] : vector<8x128xf32> to vector<8xf32>
    %37 = vector.shape_cast %36 : vector<8xf32> to vector<8x1xf32>
    %cst_20 = arith.constant 7.812500e-03 : f32
    %38 = vector.broadcast %cst_20 : f32 to vector<8x1xf32>
    %39 = arith.mulf %34, %38 : vector<8x1xf32>
    %cst_21 = arith.constant 7.812500e-03 : f32
    %40 = vector.broadcast %cst_21 : f32 to vector<8x1xf32>
    %41 = arith.mulf %37, %40 : vector<8x1xf32>
    %42 = arith.mulf %39, %39 : vector<8x1xf32>
    %43 = arith.subf %41, %42 : vector<8x1xf32>
    %cst_22 = arith.constant 0.000000e+00 : f32
    %44 = vector.broadcast %cst_22 : f32 to vector<8x1xf32>
    %45 = arith.maximumf %43, %44 : vector<8x1xf32>
    %cst_23 = arith.constant 9.99999996E-13 : f32
    %46 = vector.broadcast %cst_23 : f32 to vector<8x1xf32>
    %47 = arith.addf %45, %46 : vector<8x1xf32>
    %48 = math.rsqrt %47 : vector<8x1xf32>
    %49 = vector.broadcast %39 : vector<8x1xf32> to vector<8x128xf32>
    %50 = arith.subf %32, %49 : vector<8x128xf32>
    %51 = vector.broadcast %48 : vector<8x1xf32> to vector<8x128xf32>
    %52 = arith.mulf %50, %51 : vector<8x128xf32>
    %53 = vector.broadcast %3 : vector<1x128xf32> to vector<8x128xf32>
    %54 = arith.mulf %52, %53 : vector<8x128xf32>
    %55 = vector.broadcast %4 : vector<1x128xf32> to vector<8x128xf32>
    %56 = arith.addf %54, %55 : vector<8x128xf32>
    %c0_24 = arith.constant 0 : index
    %c0_25 = arith.constant 0 : index
    %57 = vector.load %arg8[%c0_24, %c0_25] : memref<8x128xf32, #tpu.memory_space<vmem>>, vector<8x128xf32>
    tpu.vector_store %arg8[%c0_24, %c0_25], %56 {strides = array<i32>} : memref<8x128xf32, #tpu.memory_space<vmem>>, vector<8x128xf32>,
    return
  }
  func.func @transform_0(%arg0: i32) -> (i32, i32) {
    %c0_i32 = arith.constant 0 : i32
    %c0_i32_0 = arith.constant 0 : i32
    return %arg0, %c0_i32 : i32, i32
  }
  func.func @transform_1(%arg0: i32) -> (i32, i32) {
    %c0_i32 = arith.constant 0 : i32
    %c0_i32_0 = arith.constant 0 : i32
    return %arg0, %c0_i32 : i32, i32
  }
  func.func @transform_2(%arg0: i32) -> (i32, i32) {
    %c0_i32 = arith.constant 0 : i32
    %c0_i32_0 = arith.constant 0 : i32
    %c0_i32_1 = arith.constant 0 : i32
    return %c0_i32, %c0_i32_0 : i32, i32
  }
  func.func @transform_3(%arg0: i32) -> (i32, i32) {
    %c0_i32 = arith.constant 0 : i32
    %c0_i32_0 = arith.constant 0 : i32
    %c0_i32_1 = arith.constant 0 : i32
    return %c0_i32, %c0_i32_0 : i32, i32
  }
  func.func @transform_4(%arg0: i32) -> (i32, i32) {
    %c0_i32 = arith.constant 0 : i32
    %c0_i32_0 = arith.constant 0 : i32
    %c0_i32_1 = arith.constant 0 : i32
    return %c0_i32, %c0_i32_0 : i32, i32
  }
  func.func @transform_5(%arg0: i32) -> (i32, i32) {
    %c0_i32 = arith.constant 0 : i32
    %c0_i32_0 = arith.constant 0 : i32
    %c0_i32_1 = arith.constant 0 : i32
    return %c0_i32, %c0_i32_0 : i32, i32
  }
  func.func @transform_6(%arg0: i32) -> (i32, i32) {
    %c0_i32 = arith.constant 0 : i32
    %c0_i32_0 = arith.constant 0 : i32
    %c0_i32_1 = arith.constant 0 : i32
    return %c0_i32, %c0_i32_0 : i32, i32
  }
  func.func @transform_7(%arg0: i32) -> (i32, i32) {
    %c0_i32 = arith.constant 0 : i32
    %c0_i32_0 = arith.constant 0 : i32
    return %arg0, %c0_i32 : i32, i32
  }
}

module attributes {stable_mosaic.version = 11 : i64} {
  func.func @bert_output_adapters_kernel(%arg0: i32, %arg1: memref<8x256xbf16, #tpu.memory_space<vmem>>, %arg2: memref<8x128xbf16, #tpu.memory_space<vmem>>, %arg3: memref<256x128xbf16, #tpu.memory_space<vmem>>, %arg4: memref<128x128xbf16, #tpu.memory_space<vmem>>, %arg5: memref<128x128xbf16, #tpu.memory_space<vmem>>, %arg6: memref<1x128xf32, #tpu.memory_space<vmem>>, %arg7: memref<4x128xf32, #tpu.memory_space<vmem>>, %arg8: memref<8x128xf32, #tpu.memory_space<vmem>>) attributes {dimension_semantics = [#tpu.dimension_semantics<parallel>], iteration_bounds = array<i64: 2>, scalar_prefetch = 0 : i64, scratch_operands = 0 : i64, tpu.core_type = #tpu.core_type<tc>, window_params = [{transform_indices = @transform_0, window_bounds = array<i64: 8, 256>}, {transform_indices = @transform_1, window_bounds = array<i64: 8, 128>}, {pipeline_mode = #tpu.pipeline_mode<synchronous>, transform_indices = @transform_2, window_bounds = array<i64: 256, 128>}, {pipeline_mode = #tpu.pipeline_mode<synchronous>, transform_indices = @transform_3, window_bounds = array<i64: 128, 128>}, {pipeline_mode = #tpu.pipeline_mode<synchronous>, transform_indices = @transform_4, window_bounds = array<i64: 128, 128>}, {pipeline_mode = #tpu.pipeline_mode<synchronous>, transform_indices = @transform_5, window_bounds = array<i64: 1, 128>}, {pipeline_mode = #tpu.pipeline_mode<synchronous>, transform_indices = @transform_6, window_bounds = array<i64: 4, 128>}, {transform_indices = @transform_7, window_bounds = array<i64: 8, 128>}]} {
    %c0 = arith.constant 0 : index
    %c0_0 = arith.constant 0 : index
    %0 = vector.load %arg7[%c0, %c0_0] : memref<4x128xf32, #tpu.memory_space<vmem>>, vector<4x128xf32>
    %1 = vector.extract_strided_slice %0 {offsets = [0, 0], sizes = [1, 128], strides = [1, 1]} : vector<4x128xf32> to vector<1x128xf32>
    %2 = vector.extract_strided_slice %0 {offsets = [1, 0], sizes = [1, 128], strides = [1, 1]} : vector<4x128xf32> to vector<1x128xf32>
    %3 = vector.extract_strided_slice %0 {offsets = [2, 0], sizes = [1, 128], strides = [1, 1]} : vector<4x128xf32> to vector<1x128xf32>
    %4 = vector.extract_strided_slice %0 {offsets = [3, 0], sizes = [1, 128], strides = [1, 1]} : vector<4x128xf32> to vector<1x128xf32>
    %c0_1 = arith.constant 0 : index
    %c0_2 = arith.constant 0 : index
    %5 = vector.load %arg6[%c0_1, %c0_2] : memref<1x128xf32, #tpu.memory_space<vmem>>, vector<1x128xf32>
    %c0_3 = arith.constant 0 : index
    %c0_4 = arith.constant 0 : index
    %6 = vector.load %arg1[%c0_3, %c0_4] : memref<8x256xbf16, #tpu.memory_space<vmem>>, vector<8x256xbf16>
    %c0_5 = arith.constant 0 : index
    %c0_6 = arith.constant 0 : index
    %7 = vector.load %arg3[%c0_5, %c0_6] : memref<256x128xbf16, #tpu.memory_space<vmem>>, vector<256x128xbf16>
    %cst = arith.constant dense<0.000000e+00> : vector<8x128xf32>
    %8 = tpu.matmul %6, %7, %cst {dimension_numbers = #tpu.dot_dimension_numbers<[1], [0], [0], [1], [0, 0, 1, 1], [], []>} : vector<8x256xbf16>, vector<256x128xbf16>, vector<8x128xf32> -> vector<8x128xf32>
    %9 = vector.broadcast %1 : vector<1x128xf32> to vector<8x128xf32>
    %10 = arith.addf %8, %9 : vector<8x128xf32>
    %11 = arith.truncf %10 : vector<8x128xf32> to vector<8x128xbf16>
    %c0_7 = arith.constant 0 : index
    %c0_8 = arith.constant 0 : index
    %12 = vector.load %arg4[%c0_7, %c0_8] : memref<128x128xbf16, #tpu.memory_space<vmem>>, vector<128x128xbf16>
    %cst_9 = arith.constant dense<0.000000e+00> : vector<8x128xf32>
    %13 = tpu.matmul %11, %12, %cst_9 {dimension_numbers = #tpu.dot_dimension_numbers<[1], [0], [0], [1], [0, 0, 1, 1], [], []>} : vector<8x128xbf16>, vector<128x128xbf16>, vector<8x128xf32> -> vector<8x128xf32>
    %14 = vector.broadcast %5 : vector<1x128xf32> to vector<8x128xf32>
    %15 = arith.addf %13, %14 : vector<8x128xf32>
    %cst_10 = arith.constant 5.000000e-01 : f32
    %16 = vector.broadcast %cst_10 : f32 to vector<8x128xf32>
    %17 = arith.mulf %16, %15 : vector<8x128xf32>
    %cst_11 = arith.constant 0.707106769 : f32
    %18 = vector.broadcast %cst_11 : f32 to vector<8x128xf32>
    %19 = arith.mulf %15, %18 : vector<8x128xf32>
    %20 = math.erf %19 : vector<8x128xf32>
    %cst_12 = arith.constant 1.000000e+00 : f32
    %21 = vector.broadcast %cst_12 : f32 to vector<8x128xf32>
    %22 = arith.addf %21, %20 : vector<8x128xf32>
    %23 = arith.mulf %17, %22 : vector<8x128xf32>
    %24 = arith.truncf %23 : vector<8x128xf32> to vector<8x128xbf16>
    %c0_13 = arith.constant 0 : index
    %c0_14 = arith.constant 0 : index
    %25 = vector.load %arg5[%c0_13, %c0_14] : memref<128x128xbf16, #tpu.memory_space<vmem>>, vector<128x128xbf16>
    %cst_15 = arith.constant dense<0.000000e+00> : vector<8x128xf32>
    %26 = tpu.matmul %24, %25, %cst_15 {dimension_numbers = #tpu.dot_dimension_numbers<[1], [0], [0], [1], [0, 0, 1, 1], [], []>} : vector<8x128xbf16>, vector<128x128xbf16>, vector<8x128xf32> -> vector<8x128xf32>
    %27 = vector.broadcast %2 : vector<1x128xf32> to vector<8x128xf32>
    %28 = arith.addf %26, %27 : vector<8x128xf32>
    %29 = arith.addf %10, %28 : vector<8x128xf32>
    %c0_16 = arith.constant 0 : index
    %c0_17 = arith.constant 0 : index
    %30 = vector.load %arg2[%c0_16, %c0_17] : memref<8x128xbf16, #tpu.memory_space<vmem>>, vector<8x128xbf16>
    %31 = arith.extf %30 : vector<8x128xbf16> to vector<8x128xf32>
    %32 = arith.addf %29, %31 : vector<8x128xf32>
    %cst_18 = arith.constant dense<0.000000e+00> : vector<8xf32>
    %33 = vector.multi_reduction <add>, %32, %cst_18 [1] : vector<8x128xf32> to vector<8xf32>
    %34 = vector.shape_cast %33 : vector<8xf32> to vector<8x1xf32>
    %35 = arith.mulf %32, %32 : vector<8x128xf32>
    %cst_19 = arith.constant dense<0.000000e+00> : vector<8xf32>
    %36 = vector.multi_reduction <add>, %35, %cst_19 [1] : vector<8x128xf32> to vector<8xf32>
    %37 = vector.shape_cast %36 : vector<8xf32> to vector<8x1xf32>
    %cst_20 = arith.constant 7.812500e-03 : f32
    %38 = vector.broadcast %cst_20 : f32 to vector<8x1xf32>
    %39 = arith.mulf %34, %38 : vector<8x1xf32>
    %cst_21 = arith.constant 7.812500e-03 : f32
    %40 = vector.broadcast %cst_21 : f32 to vector<8x1xf32>
    %41 = arith.mulf %37, %40 : vector<8x1xf32>
    %42 = arith.mulf %39, %39 : vector<8x1xf32>
    %43 = arith.subf %41, %42 : vector<8x1xf32>
    %cst_22 = arith.constant 0.000000e+00 : f32
    %44 = vector.broadcast %cst_22 : f32 to vector<8x1xf32>
    %45 = arith.maximumf %43, %44 : vector<8x1xf32>
    %cst_23 = arith.constant 9.99999996E-13 : f32
    %46 = vector.broadcast %cst_23 : f32 to vector<8x1xf32>
    %47 = arith.addf %45, %46 : vector<8x1xf32>
    %48 = math.rsqrt %47 : vector<8x1xf32>
    %49 = vector.broadcast %39 : vector<8x1xf32> to vector<8x128xf32>
    %50 = arith.subf %32, %49 : vector<8x128xf32>
    %51 = vector.broadcast %48 : vector<8x1xf32> to vector<8x128xf32>
    %52 = arith.mulf %50, %51 : vector<8x128xf32>
    %53 = vector.broadcast %3 : vector<1x128xf32> to vector<8x128xf32>
    %54 = arith.mulf %52, %53 : vector<8x128xf32>
    %55 = vector.broadcast %4 : vector<1x128xf32> to vector<8x128xf32>
    %56 = arith.addf %54, %55 : vector<8x128xf32>
    %c0_24 = arith.constant 0 : index
    %c0_25 = arith.constant 0 : index
    %57 = vector.load %arg8[%c0_24, %c0_25] : memref<8x128xf32, #tpu.memory_space<vmem>>, vector<8x128xf32>
    tpu.vector_store %arg8[%c0_24, %c0_25], %56 {strides = array<i32>} : memref<8x128xf32, #tpu.memory_space<vmem>>, vector<8x128xf32>,
    return
  }
  func.func @transform_0(%arg0: i32) -> (i32, i32) {
    %c0_i32 = arith.constant 0 : i32
    %c0_i32_0 = arith.constant 0 : i32
    return %arg0, %c0_i32 : i32, i32
  }
  func.func @transform_1(%arg0: i32) -> (i32, i32) {
    %c0_i32 = arith.constant 0 : i32
    %c0_i32_0 = arith.constant 0 : i32
    return %arg0, %c0_i32 : i32, i32
  }
  func.func @transform_2(%arg0: i32) -> (i32, i32) {
    %c0_i32 = arith.constant 0 : i32
    %c0_i32_0 = arith.constant 0 : i32
    %c0_i32_1 = arith.constant 0 : i32
    return %c0_i32, %c0_i32_0 : i32, i32
  }
  func.func @transform_3(%arg0: i32) -> (i32, i32) {
    %c0_i32 = arith.constant 0 : i32
    %c0_i32_0 = arith.constant 0 : i32
    %c0_i32_1 = arith.constant 0 : i32
    return %c0_i32, %c0_i32_0 : i32, i32
  }
  func.func @transform_4(%arg0: i32) -> (i32, i32) {
    %c0_i32 = arith.constant 0 : i32
    %c0_i32_0 = arith.constant 0 : i32
    %c0_i32_1 = arith.constant 0 : i32
    return %c0_i32, %c0_i32_0 : i32, i32
  }
  func.func @transform_5(%arg0: i32) -> (i32, i32) {
    %c0_i32 = arith.constant 0 : i32
    %c0_i32_0 = arith.constant 0 : i32
    %c0_i32_1 = arith.constant 0 : i32
    return %c0_i32, %c0_i32_0 : i32, i32
  }
  func.func @transform_6(%arg0: i32) -> (i32, i32) {
    %c0_i32 = arith.constant 0 : i32
    %c0_i32_0 = arith.constant 0 : i32
    %c0_i32_1 = arith.constant 0 : i32
    return %c0_i32, %c0_i32_0 : i32, i32
  }
  func.func @transform_7(%arg0: i32) -> (i32, i32) {
    %c0_i32 = arith.constant 0 : i32
    %c0_i32_0 = arith.constant 0 : i32
    return %arg0, %c0_i32 : i32, i32
  }
}

</mosaic_0001>

<bundles_post_ra>
// kernel: tpu_custom_call.1
= control target key start
LH: loop header
LB: loop body
LE: loop exit
PB: predicated region body
PF: predicated region fallthrough
CT: control target
= control target key end

     0   :  { %s1831_s0 = inlined_call_operand.hbm [shape: bf16[16,256], index: 0, kind: input, shape index: {}]   ;;  %s1832_s1 = inlined_call_operand.hbm [shape: bf16[16,128], index: 1, kind: input, shape index: {}]   ;;  %s1833_s2 = inlined_call_operand.hbm [shape: bf16[256,128], index: 2, kind: input, shape index: {}]   ;;  %s1834_s3 = inlined_call_operand.hbm [shape: bf16[128,128], index: 3, kind: input, shape index: {}]   ;;  %s1835_s4 = inlined_call_operand.hbm [shape: bf16[128,128], index: 4, kind: input, shape index: {}]   ;;  %s1836_s5 = inlined_call_operand.vmem [shape: f32[1,128], index: 5, kind: input, shape index: {}]   ;;  %s1837_s6 = inlined_call_operand.vmem [shape: f32[4,128], index: 6, kind: input, shape index: {}]   ;;  %s1838_s7 = inlined_call_operand.hbm [shape: f32[16,128], index: 7, kind: output, shape index: {}]  }
   0x1   :  { %1844 = sst [smem:[#allocation18_spill]] %s1831_s0 }
   0x2   :  { %1845 = sst [smem:[#allocation19_spill]] %s1833_s2 }
   0x3   :  { %12 = vsyncpa [#allocation3], 0 }
   0x4   :  { %14 = vsyncpa [#allocation3 + $0x1], 0 }
   0x5   :  { %15 = vsyncpa [#allocation6], 0 }
   0x6   :  { %17 = vsyncpa [#allocation6 + $0x1], 0 }
   0x7   :  { %18 = vsyncpa [#allocation9], 0 }
   0x8   :  { %19 = vsyncpa [#allocation4], 0 }
   0x9   :  { %21 = vsyncpa [#allocation4 + $0x1], 0  ;;  %s1483_s24 = smov 0   ;;  %s1485_s25 = smov 0  }
   0xa   :  { %s1487_s26 = smov 0   ;;  %s1489_s27 = smov 0  }
   0xb LB: > { %s1504_s28 = sadd.s32 4294967295, %s1431_s27   ;;  %s947_s29 = sadd.s32 4294967294, %s1431_s27   ;;  %s1431_s27 = sphi %s1489_s27, %s1871_s27   ;;  %s1427_s26 = sphi %s1487_s26, %s1870_s26   ;;  %s1423_s25 = sphi %s1485_s25, %s1869_s25   ;;  %s1419_s24 = sphi %s1483_s24, %s1868_s24  }
   0xc   : > { %p47_p0 = scmp.ne.s32.totalorder %s1423_s25, %s1419_s24  ;;  %p1839_p1 = scmp.eq.s32.totalorder %s1504_s28, 0 }
   0xd   : > { %p208_p3 = scmp.eq.s32.totalorder %s947_s29, 1  ;;  %p948_p5 = scmp.ge.s32.totalorder %s1431_s27, 1 }
   0xe   : > { %p1513_p4 = por %p1839_p1, %p47_p0  ;;  %p215_p7 = scmp.lt.s32.totalorder %s1431_s27, 3 }
   0xf   : > { %p1518_p6 = por %p208_p3, %p47_p0  ;;  %s1433_s10 = smov [#allocation7]  }
  0x10   : > { %s1846_s30 = scalar_select %p1513_p4, 1, 0 }
  0x11   : > { %s1847_s8 = scalar_select %p1518_p6, 1, 0 }
  0x12   : > { %p1523_p8 = pnand %p948_p5, %p215_p7  ;;  %s227_s11 = sshll.u32 %s1433_s10, 4  ;;  %s1527_s11 = int_to_ptr.vmem [resolvable:$true] %s227_s11 }
  0x13   : > { %1848 = sst [smem:[#allocation17_spill]] %s1847_s8  ;;  %s1434_s13 = smov [#allocation8]  }
  0x14   : > { %s1849_s9 = scalar_select %p1523_p8, 1, 0 }
  0x15   : > { %p1103_p9 = pneg %p1523_p8  ;;  %s240_s14 = sshll.u32 %s1434_s13, 4  ;;  %s1538_s14 = int_to_ptr.vmem [resolvable:$true] %s240_s14 }
  0x16   : > { %s1435_s15 = smov [#allocation10]   ;;  %s1851_s2 = sld [smem:[#allocation19_spill]] }
  0x17   : > { %p1534_p11 = pnand %p1103_p9, %p1839_p1  ;;  %s1540_s16 = sshll.u32 %s1435_s15, 4  ;;  %s254_s16 = int_to_ptr.vmem [resolvable:$true] %s1540_s16 }
  0x19   : > { %p1550_p13 = pneg %p1534_p11 }
  0x1c   : > { %s1209_s19 = scalar_lea.hbm %s1851_s2, 2048 }
  0x1d   : > { %p1210_p12 = scmp.ne.s32.totalorder %s1851_s2, %s1209_s19  ;;  %p1216_p5 = scmp.lt.u32.totalorder %s1209_s19, %s1851_s2 }
  0x1f   : > { %p1212_p0 = pnand %p1550_p13, %p1210_p12 }
  0x21   : > { %p1213_p3 = pneg %p1212_p0 }
  0x23   : > { %p1218_p7 = pnand %p1216_p5, %p1213_p3 }
  0x25   : > { %1221 = shalt.err (!%p1218_p7)
}
  0x26   : > { %s1222_s10 = scalar_lea.vmem %s1527_s11, 2048  ;;  %p1230_p2 = scmp.lt.s32.totalorder %s1527_s11, %s1527_s11 }
  0x27   : > { %p1223_p9 = scmp.ne.s32.totalorder %s1527_s11, %s1222_s10  ;;  %p1231_p6 = scmp.lt.s32.totalorder %s1222_s10, %s1222_s10 }
  0x29   : > { %p1225_p10 = pnand %p1223_p9, %p1550_p13  ;;  %p1232_p12 = por %p1231_p6, %p1230_p2 }
  0x2b   : > { %p1226_p1 = pneg %p1225_p10 }
  0x2d   : > { %p1233_p0 = pnand %p1232_p12, %p1226_p1 }
  0x2f   : > { %1236 = shalt.err (!%p1233_p0)
}
  0x30   : > { %s1436_s13 = smov 64   ;;  %s1437_s15 = smov 4  }
  0x31   : > { %1106 = dma.hbm_to_vmem [thread:$0]  (!%p1534_p11), %s1851_s2, 2048, %s1527_s11, [#allocation6], %s1436_s13, %s1436_s13, %s1437_s15  }
  0x32   : > { %s1237_s21 = scalar_lea.hbm %s1834_s3, 1024 }
  0x33   : > { %p1238_p1 = scmp.ne.s32.totalorder %s1834_s3, %s1237_s21  ;;  %p1244_p10 = scmp.lt.u32.totalorder %s1237_s21, %s1834_s3 }
  0x35   : > { %p1240_p2 = pnand %p1238_p1, %p1550_p13 }
  0x37   : > { %p1241_p6 = pneg %p1240_p2 }
  0x39   : > { %p1246_p3 = pnand %p1244_p10, %p1241_p6 }
  0x3b   : > { %1249 = shalt.err (!%p1246_p3)
}
  0x3c   : > { %s1250_s11 = scalar_lea.vmem %s1538_s14, 1024  ;;  %p1258_p12 = scmp.lt.s32.totalorder %s1538_s14, %s1538_s14 }
  0x3d   : > { %p1251_p5 = scmp.ne.s32.totalorder %s1538_s14, %s1250_s11  ;;  %p1259_p0 = scmp.lt.s32.totalorder %s1250_s11, %s1250_s11 }
  0x3f   : > { %p1253_p7 = pnand %p1251_p5, %p1550_p13  ;;  %p1260_p1 = por %p1259_p0, %p1258_p12 }
  0x41   : > { %p1254_p9 = pneg %p1253_p7 }
  0x43   : > { %p1261_p2 = pnand %p1260_p1, %p1254_p9 }
  0x45   : > { %1264 = shalt.err (!%p1261_p2)
}
  0x46   : > { %1109 = dma.hbm_to_vmem [thread:$0]  (!%p1534_p11), %s1834_s3, 1024, %s1538_s14, [#allocation9], %s1436_s13, %s1436_s13, %s1437_s15  }
  0x47   : > { %s1265_s20 = scalar_lea.hbm %s1835_s4, 1024 }
  0x48   : > { %p1266_p6 = scmp.ne.s32.totalorder %s1835_s4, %s1265_s20  ;;  %p1272_p5 = scmp.lt.u32.totalorder %s1265_s20, %s1835_s4 }
  0x4a   : > { %p1268_p10 = pnand %p1266_p6, %p1550_p13 }
  0x4c   : > { %p1269_p3 = pneg %p1268_p10 }
  0x4e   : > { %p1274_p7 = pnand %p1272_p5, %p1269_p3 }
  0x50   : > { %1277 = shalt.err (!%p1274_p7)
}
  0x51   : > { %s1278_s11 = scalar_lea.vmem %s254_s16, 1024  ;;  %p1286_p1 = scmp.lt.s32.totalorder %s254_s16, %s254_s16 }
  0x52   : > { %p1279_p9 = scmp.ne.s32.totalorder %s254_s16, %s1278_s11  ;;  %p1287_p2 = scmp.lt.s32.totalorder %s1278_s11, %s1278_s11 }
  0x54   : > { %p1281_p12 = pnand %p1279_p9, %p1550_p13  ;;  %p1288_p4 = por %p1287_p2, %p1286_p1 }
  0x56   : > { %p1282_p0 = pneg %p1281_p12 }
  0x58   : > { %p1289_p8 = pnand %p1288_p4, %p1282_p0 }
  0x5a   : > { %1292 = shalt.err (!%p1289_p8)
}
  0x5b   : > { %1112 = dma.hbm_to_vmem [thread:$0]  (!%p1534_p11), %s1835_s4, 1024, %s254_s16, [#allocation9], %s1436_s13, %s1436_s13, %s1437_s15  }
  0x5c   : > { %s1623_s22 = sadd.s32 1, %s1431_s27   ;;  %s34_s17 = sadd.s32 1, %s1427_s26 }
  0x5d   : > { %s31_s12 = ssub.s32 %s1431_s27, %s1623_s22  ;;  %p41_p8 = scmp.ne.s32.totalorder %s1427_s26, %s1423_s25 }
  0x5e   : > { %p32_p4 = scmp.eq.s32.totalorder %s31_s12, 0  ;;  %p42_p13 = scmp.eq.s32.totalorder %s1431_s27, 0 }
  0x5f   : > { %p1127_p6 = scmp.lt.s32.totalorder %s1431_s27, 2  ;;  %p1853_p3 = scmp.eq.s32.totalorder %s1504_s28, 1 }
  0x60   : > { %s1633_s18 = scalar_select %p32_p4, %s1427_s26, %s34_s17  }
  0x61   : > { %p43_p10 = por %p42_p13, %p41_p8  ;;  %p1637_p5 = por %p1853_p3, %p41_p8 }
  0x62   : > { %s1642_s20 = sand.u32 1, %s1427_s26   ;;  %s1004_s16 = sshll.u32 %s1431_s27, 7 }
  0x63   : > { %s1854_s19 = scalar_select %p1637_p5, 1, 0 }
  0x64   : > { %s953_s13 = sshll.u32 %s1642_s20, 3  ;;  %s1855_s0 = sld [smem:[#allocation18_spill]] }
  0x65   : > { %s277_s29 = scalar_lea.vmem [#allocation2], %s953_s13  ;;  %p1651_p11 = pnand %p1127_p6, %p43_p10 }
  0x66   : > { %s285_s10 = sshll.u32 %s277_s29, 4  ;;  %s274_s8 = scalar_lea.sflag [#allocation3], %s1642_s20  ;;  %s1655_s10 = int_to_ptr.vmem [resolvable:$true] %s285_s10 }
  0x67   : > { %p1295_p9 = pneg %p1651_p11 }
  0x6a   : > { %s1649_s23 = scalar_lea.hbm %s1855_s0, %s1004_s16  ;;  %s1298_s13 = scalar_lea.hbm %s1855_s0, 256 }
  0x6b   : > { %s1293_s12 = scalar_lea.hbm %s1649_s23, 128  ;;  %p1299_p1 = scmp.lt.u32.totalorder %s1649_s23, %s1855_s0 }
  0x6c   : > { %p1294_p7 = scmp.ne.s32.totalorder %s1649_s23, %s1293_s12  ;;  %p1300_p2 = scmp.lt.u32.totalorder %s1298_s13, %s1293_s12 }
  0x6d   : > { %p1302_p8 = scmp.lt.u32.totalorder %s1293_s12, %s1649_s23 }
  0x6e   : > { %p1296_p12 = pnand %p1295_p9, %p1294_p7  ;;  %p1301_p4 = por %p1300_p2, %p1299_p1 }
  0x70   : > { %p1297_p0 = pneg %p1296_p12  ;;  %p1303_p13 = por %p1302_p8, %p1301_p4 }
  0x72   : > { %p1304_p6 = pnand %p1303_p13, %p1297_p0 }
  0x74   : > { %1307 = shalt.err (!%p1304_p6)
}
  0x75   : > { %s1308_s29 = scalar_lea.vmem %s1655_s10, 128  ;;  %s1438_s17 = smov [#allocation2]  }
  0x76   : > { %p1309_p10 = scmp.ne.s32.totalorder %s1655_s10, %s1308_s29  ;;  %s1313_s16 = sshll.u32 %s1438_s17, 4  ;;  %s1314_s16 = int_to_ptr.vmem [resolvable:$false] %s1313_s16 }
  0x77   : > { %s1315_s15 = scalar_lea.vmem %s1314_s16, 256  ;;  %p1316_p12 = scmp.lt.s32.totalorder %s1655_s10, %s1314_s16 }
  0x78   : > { %p1311_p3 = pnand %p1309_p10, %p1295_p9  ;;  %p1317_p1 = scmp.lt.s32.totalorder %s1315_s15, %s1308_s29 }
  0x7a   : > { %p1312_p7 = pneg %p1311_p3  ;;  %p1318_p2 = por %p1317_p1, %p1316_p12 }
  0x7c   : > { %p1319_p4 = pnand %p1318_p2, %p1312_p7 }
  0x7e   : > { %1322 = shalt.err (!%p1319_p4)
}
  0x7f   : > { %1116 = dma.hbm_to_vmem [thread:$0]  (!%p1651_p11), %s1649_s23, 128, %s1655_s10, %s274_s8  }
  0x80   : > { %s956_s12 = sshll.u32 %s1642_s20, 2  ;;  %s957_s13 = sshll.u32 %s1431_s27, 6 }
  0x81   : > { %s1689_s14 = scalar_lea.hbm %s1832_s1, %s957_s13  ;;  %s296_s29 = scalar_lea.vmem [#allocation5], %s956_s12 }
  0x82   : > { %s303_s16 = sshll.u32 %s296_s29, 4  ;;  %s1857_s15 = sand.u32 1, %s1431_s27   ;;  %s304_s16 = int_to_ptr.vmem [resolvable:$true] %s303_s16 }
  0x83   : > { %s293_s0 = scalar_lea.sflag [#allocation6], %s1857_s15  ;;  %s1323_s2 = scalar_lea.hbm %s1689_s14, 64 }
  0x84   : > { %p1324_p0 = scmp.ne.s32.totalorder %s1689_s14, %s1323_s2  ;;  %s1328_s10 = scalar_lea.hbm %s1832_s1, 128 }
  0x85   : > { %p1329_p6 = scmp.lt.u32.totalorder %s1689_s14, %s1832_s1  ;;  %p1330_p10 = scmp.lt.u32.totalorder %s1328_s10, %s1323_s2 }
  0x86   : > { %p1326_p8 = pnand %p1324_p0, %p1295_p9  ;;  %p1332_p7 = scmp.lt.u32.totalorder %s1323_s2, %s1689_s14 }
  0x87   : > { %p1331_p3 = por %p1330_p10, %p1329_p6 }
  0x88   : > { %p1327_p13 = pneg %p1326_p8 }
  0x89   : > { %p1333_p12 = por %p1332_p7, %p1331_p3 }
  0x8b   : > { %p1334_p1 = pnand %p1333_p12, %p1327_p13 }
  0x8d   : > { %1337 = shalt.err (!%p1334_p1)
}
  0x8e   : > { %s1338_s12 = scalar_lea.vmem %s304_s16, 64  ;;  %s1439_s21 = smov [#allocation5]  }
  0x8f   : > { %p1339_p2 = scmp.ne.s32.totalorder %s304_s16, %s1338_s12  ;;  %s1343_s17 = sshll.u32 %s1439_s21, 4  ;;  %s1344_s17 = int_to_ptr.vmem [resolvable:$false] %s1343_s17 }
  0x90   : > { %s1345_s29 = scalar_lea.vmem %s1344_s17, 128  ;;  %p1346_p8 = scmp.lt.s32.totalorder %s304_s16, %s1344_s17 }
  0x91   : > { %p1341_p4 = pnand %p1339_p2, %p1295_p9  ;;  %p1347_p5 = scmp.lt.s32.totalorder %s1345_s29, %s1338_s12 }
  0x93   : > { %p1342_p0 = pneg %p1341_p4  ;;  %p1348_p6 = por %p1347_p5, %p1346_p8 }
  0x95   : > { %p1349_p10 = pnand %p1348_p6, %p1342_p0 }
  0x97   : > { %1352 = shalt.err (!%p1349_p10)
}
  0x98   : > { %1119 = dma.hbm_to_vmem [thread:$0]  (!%p1651_p11), %s1689_s14, 64, %s304_s16, %s293_s0  }
  0x99   : > { %p1858_p13 = scmp.ne.s32.totalorder %s1849_s9, 0 }
  0x9a   : > { %s1715_s2 = sand.u32 (!%p1858_p13), 1, %s1423_s25   ;;  %p1859_p5 = scmp.ne.s32.totalorder (!%p1858_p13), %s1846_s30, 0 }
  0x9b   : > { %312 = sbr.rel (%p1858_p13) target bundleno = 1061 (0x425), region = 48  ;;  %s959_s15 = sshll.u32 (!%p1858_p13), %s1715_s2, 3 }
  0x9c   : > { %s315_s20 = scalar_lea.sflag (!%p1858_p13), [#allocation3], %s1715_s2  ;;  %s1721_s23 = scalar_lea.vmem (!%p1858_p13), [#allocation2], %s959_s15 }
  0xa2   : > { %1398 = dma.done.wait (%p1859_p5), %s315_s20, 128  }
  0xa3   : > { %1400 = vsyncadd (%p1859_p5), %s315_s20, 4294967168  ;;  %s323_s0 = sand.u32 1, %s1504_s28   ;;  %s960_s9 = sshll.u32 %s1715_s2, 2 }
  0xa4   : > { %s324_s11 = scalar_lea.sflag [#allocation6], %s323_s0  ;;  %s1729_s14 = scalar_lea.vmem [#allocation5], %s960_s9 }
  0xa5   : > { %1402 = dma.done.wait (%p1859_p5), %s324_s11, 64  }
  0xa6   : > { %1404 = vsyncadd (%p1859_p5), %s324_s11, 4294967232  ;;  %p1860_p11 = scmp.eq.s32.totalorder %s1504_s28, 0 }
  0xa8   : > { %1406 = dma.done.wait (%p1860_p11), [#allocation6], 2048   ;;  %p1861_p9 = pmov %p1860_p11 }
  0xaa   : > { %1408 = vsyncadd (%p1861_p9), [#allocation6], 4294965248  ;;  %p1862_p3 = pmov %p1861_p9 }
  0xac   : > { %1410 = dma.done.wait (%p1862_p3), [#allocation9], 2048   ;;  %p1863_p7 = pmov %p1862_p3 }
  0xad   : > { %v1440_v0 = vmov 0.0   ;;  %v1171_v1 = vld [vmem:[#allocation7 + $0x40] sm:$0xff]   ;;  %v1173_v3 = vld [vmem:[#allocation7 + $0x48] sm:$0xff]   ;;  %v1175_v5 = vld [vmem:[#allocation7 + $0x50] sm:$0xff]   ;;  %vm1441_vm0 = vmmov 0   ;;  %v411_v31 = vlaneseq  ;;  %s1001_s13 = sshll.u32 %s1504_s28, 7 }
  0xae   : > { %1412 = vsyncadd (%p1863_p7), [#allocation9], 4294965248  ;;  %1045 = vmatprep.subr.bf16.mxu1 %v1440_v0  ;;  %v1172_v2 = vld [vmem:[#allocation7] sm:$0xff]   ;;  %1005 = vmatprep.subr.bf16.mxu0 %v1171_v1  ;;  %v1174_v4 = vld [vmem:[#allocation7 + $0x8] sm:$0xff]   ;;  %s374_s12 = scalar_lea.vmem [#allocation11], %s959_s15  ;;  %s1787_s20 = scalar_lea.hbm %s1838_s7, %s1001_s13 }
  0xaf   : > { %1006 = vmatpush3.bf16.msra.mxu0 %v1172_v2  ;;  %v1176_v6 = vld [vmem:[#allocation7 + $0x10] sm:$0xff]   ;;  %v1177_v7 = vld [vmem:[#allocation7 + $0x58] sm:$0xff]   ;;  %v1179_v9 = vld [vmem:[#allocation7 + $0x60] sm:$0xff]   ;;  %1061 = vmatprep.mubr.msk.bf16.mxu1 %vm1441_vm0, %v1440_v0  ;;  %v1758_v32 = vshrl.u32 %v411_v31, 7  ;;  %s826_s21 = sshll.u32 %s374_s12, 4  ;;  %p1864_p1 = scmp.ne.s32.totalorder %s1854_s19, 0  ;;  %s1789_s21 = int_to_ptr.vmem [resolvable:$true] %s826_s21 }
  0xb0   : > { %1007 = vmatprep.subr.bf16.mxu0 %v1173_v3  ;;  %v1178_v8 = vld [vmem:[#allocation7 + $0x18] sm:$0xff]   ;;  %v1180_v10 = vld [vmem:[#allocation7 + $0x20] sm:$0xff]   ;;  %v1181_v11 = vld [vmem:[#allocation7 + $0x68] sm:$0xff]   ;;  %s1353_s0 = scalar_lea.vmem %s1789_s21, 128  ;;  %s1442_s28 = smov [#allocation11]  }
  0xb1   : > { %v378_v12 = vld [vmem:[%s1721_s23] sm:$0xff]  ;;  %v1189_v14 = vld [vmem:[#allocation8] sm:$0xff]   ;;  %v1185_v19 = vld [vmem:[#allocation7 + $0x78] sm:$0xff]   ;;  %v413_v33 = vsub.s32 0, %v1758_v32  ;;  %v693_v60 = vsub.s32 1, %v1758_v32  ;;  %s813_s23 = scalar_lea.sflag [#allocation4], %s1715_s2  ;;  %p1354_p12 = scmp.ne.s32.totalorder %s1789_s21, %s1353_s0 }
  0xb2   : > { %v966_v13 = vcombine.high %v378_v12, %v378_v12  ;;  %v1182_v15 = vld [vmem:[#allocation7 + $0x28] sm:$0xff]   ;;  %v1183_v16 = vld [vmem:[#allocation7 + $0x70] sm:$0xff]   ;;  %1046 = vmatpush3.bf16.msra.mxu1 %v1189_v14  ;;  %v1186_v21 = vld [vmem:[#allocation7 + $0x38] sm:$0xff]   ;;  %v965_v23 = vcombine.low %v378_v12, %v378_v12  ;;  %s1357_s15 = sshll.u32 %s1442_s28, 4  ;;  %s1358_s15 = int_to_ptr.vmem [resolvable:$false] %s1357_s15 }
  0xb3   : > { %1008 = vmatpush3.bf16.msra.mxu0 %v1174_v4  ;;  %v1190_v17 = vld [vmem:[#allocation8 + $0x8] sm:$0xff]   ;;  %v1184_v18 = vld [vmem:[#allocation7 + $0x30] sm:$0xff]   ;;  %1047 = vmatprep.subr.bf16.mxu1 %v1440_v0  ;;  %v1192_v22 = vld [vmem:[#allocation8 + $0x18] sm:$0xff]   ;;  %p1355_p2 = pnand %p1354_p12, %p1864_p1  ;;  %s1359_s9 = scalar_lea.vmem %s1358_s15, 256 }
  0xb4   : > { %1009 = vmatprep.subr.bf16.mxu0 %v1175_v5  ;;  %550 = vmatprep.mubr.bf16.mxu0 %v966_v13  ;;  %v1191_v20 = vld [vmem:[#allocation8 + $0x10] sm:$0xff]   ;;  %v1193_v24 = vld [vmem:[#allocation8 + $0x20] sm:$0xff]   ;;  %v1194_v25 = vld [vmem:[#allocation8 + $0x28] sm:$0xff]   ;;  %p1360_p0 = scmp.lt.s32.totalorder %s1789_s21, %s1358_s15  ;;  %p1361_p8 = scmp.lt.s32.totalorder %s1359_s9, %s1353_s0 }
  0xb5   : > { %v1195_v26 = vld [vmem:[#allocation8 + $0x30] sm:$0xff]   ;;  %v1196_v27 = vld [vmem:[#allocation8 + $0x38] sm:$0xff]   ;;  %v1197_v28 = vld [vmem:[#allocation10] sm:$0xff]   ;;  %p1356_p4 = pneg %p1355_p2 }
  0xb6   : > { %1048 = vmatpush3.bf16.msra.mxu1 %v1190_v17  ;;  %v1198_v29 = vld [vmem:[#allocation10 + $0x8] sm:$0xff]   ;;  %v1199_v30 = vld [vmem:[#allocation10 + $0x10] sm:$0xff]   ;;  %v1200_v43 = vld [vmem:[#allocation10 + $0x18] sm:$0xff]   ;;  %v808_v17 = vsub.s32 3, %v1758_v32  ;;  %p1362_p6 = por %p1361_p8, %p1360_p0 }
  0xb7   : > { %1010 = vmatpush3.bf16.msra.mxu0 %v1176_v6  ;;  %1049 = vmatprep.subr.bf16.mxu1 %v1440_v0  ;;  %v1764_v34 = vld [vmem:[%s1837_s6] sm:$0xf]  ;;  %v1201_v44 = vld [vmem:[#allocation10 + $0x20] sm:$0xff]   ;;  %v1203_v46 = vld [vmem:[#allocation10 + $0x30] sm:$0xff]  }
  0xb8   : > { %1011 = vmatprep.subr.bf16.mxu0 %v1177_v7  ;;  %v414_v36 = vrot.slane %v1764_v34, %v413_v33  ;;  %v1202_v45 = vld [vmem:[#allocation10 + $0x28] sm:$0xff]   ;;  %v1204_v47 = vld [vmem:[#allocation10 + $0x38] sm:$0xff]   ;;  %v694_v61 = vrot.slane %v1764_v34, %v693_v60  ;;  %p1363_p10 = pnand %p1362_p6, %p1356_p4 }
  0xb9   : > { %v983_v48 = vld [vmem:[%s1836_s5] ss:$0 sm:$0xff]  ;;  %v784_v62 = vld [vmem:[%s1729_s14] sm:$0xf] }
  0xba   : > { %1050 = vmatpush3.bf16.msra.mxu1 %v1191_v20  ;;  %v785_v2 = vunpack.c.l.bf16 %v784_v62 }
  0xbb   : > { %1012 = vmatpush3.bf16.msra.mxu0 %v1178_v8  ;;  %1051 = vmatprep.subr.bf16.mxu1 %v1440_v0 }
  0xbc   : > { %1013 = vmatprep.subr.bf16.mxu0 %v1179_v9 }
  0xbe   : > { %1052 = vmatpush3.bf16.msra.mxu1 %v1192_v22  ;;  %v809_v22 = vrot.slane %v1764_v34, %v808_v17 }
  0xbf   : > { %1014 = vmatpush3.bf16.msra.mxu0 %v1180_v10  ;;  %1053 = vmatprep.subr.bf16.mxu1 %v1440_v0 }
  0xc0   : > { %1015 = vmatprep.subr.bf16.mxu0 %v1181_v11 }
  0xc2   : > { %1054 = vmatpush3.bf16.msra.mxu1 %v1193_v24 }
  0xc3   : > { %1016 = vmatpush3.bf16.msra.mxu0 %v1182_v15  ;;  %1055 = vmatprep.subr.bf16.mxu1 %v1440_v0 }
  0xc4   : > { %1017 = vmatprep.subr.bf16.mxu0 %v1183_v16  ;;  %v803_v16 = vsub.s32 2, %v1758_v32 }
  0xc6   : > { %1056 = vmatpush3.bf16.msra.mxu1 %v1194_v25 }
  0xc7   : > { %1018 = vmatpush3.bf16.msra.mxu0 %v1184_v18  ;;  %1057 = vmatprep.subr.bf16.mxu1 %v1440_v0  ;;  %v804_v18 = vrot.slane %v1764_v34, %v803_v16 }
  0xc8   : > { %1019 = vmatprep.subr.bf16.mxu0 %v1185_v19 }
  0xca   : > { %1058 = vmatpush3.bf16.msra.mxu1 %v1195_v26 }
  0xcb   : > { %1020 = vmatpush3.bf16.msra.mxu0 %v1186_v21  ;;  %1059 = vmatprep.subr.bf16.mxu1 %v1440_v0 }
  0xcc   : > { %1065 = vmatprep.subr.bf16.mxu0 %v1440_v0 }
  0xce   : > { %551 = vmatmul.mubr.bf16.vlgmr.msra.gmra.mrb[0].mxu0 %v965_v23  ;;  %1060 = vmatpush3.bf16.msra.mxu1 %v1196_v27 }
  0xcf   : > { %1081 = vmatprep.mubr.msk.bf16.mxu0 %vm1441_vm0, %v1440_v0  ;;  %1066 = vmatpush3.bf16.msra.mxu0 %v1197_v28 }
  0xd0   : > { %1067 = vmatprep.subr.bf16.mxu0 %v1440_v0 }
  0xd3   : > { %1068 = vmatpush3.bf16.msra.mxu0 %v1198_v29 }
  0xd4   : > { %1069 = vmatprep.subr.bf16.mxu0 %v1440_v0 }
  0xd7   : > { %1070 = vmatpush3.bf16.msra.mxu0 %v1199_v30 }
  0xd8   : > { %1071 = vmatprep.subr.bf16.mxu0 %v1440_v0 }
  0xdb   : > { %1072 = vmatpush3.bf16.msra.mxu0 %v1200_v43 }
  0xdc   : > { %1073 = vmatprep.subr.bf16.mxu0 %v1440_v0 }
  0xdf   : > { %1074 = vmatpush3.bf16.msra.mxu0 %v1201_v44 }
  0xe0   : > { %1075 = vmatprep.subr.bf16.mxu0 %v1440_v0 }
  0xe3   : > { %1076 = vmatpush3.bf16.msra.mxu0 %v1202_v45 }
  0xe4   : > { %1077 = vmatprep.subr.bf16.mxu0 %v1440_v0 }
  0xe7   : > { %1078 = vmatpush3.bf16.msra.mxu0 %v1203_v46 }
  0xe8   : > { %1079 = vmatprep.subr.bf16.mxu0 %v1440_v0 }
  0xeb   : > { %1080 = vmatpush3.bf16.msra.mxu0 %v1204_v47 }
 0x1a1   : > { %v1021_v35 = vpop.f32.mrb[0].mxu0 }
 0x1a2   : > { %v1022_v37 = vpop.f32.mrb[1].mxu0 }
 0x1a3   : > { %v1023_v38 = vadd.f32 %v1022_v37, %v1021_v35  ;;  %v1024_v39 = vpop.f32.mrb[2].mxu0 }
 0x1a4   : > { %v1025_v40 = vpop.f32.mrb[3].mxu0 }
 0x1a5   : > { %v553_v41 = vadd.f32 %v1023_v38, %v414_v36 }
 0x1a7   : > { %v558_v42 = vpack.c.bf16 %v553_v41, %v553_v41 }
 0x1a9   : > { %1062 = vmatmul.mubr.bf16.vlgmr.msra.gmra.mrb[0].mxu1 %v558_v42 }
 0x27c   : > { %v663_v49 = vpop.f32.mrb[0].mxu1 }
 0x27d   : > { %v664_v50 = vadd.f32 %v983_v48, %v663_v49  ;;  %v1063_v51 = vpop.f32.mrb[1].mxu1 }
 0x27e   : > { %v666_v52 = vpop.f32.mrb[2].mxu1 }
 0x27f   : > { %v670_v53 = vmul.f32 0.70710677, %v664_v50  ;;  %v1064_v54 = vpop.f32.mrb[3].mxu1  ;;  %v669_v56 = vmul.f32 0.5, %v664_v50 }
 0x281   : > { %1205 = verf.f32 %v670_v53 }
 0x28b   : > { %v1206_v55 = vpop.eup %1205 }
 0x28c   : > { %v672_v57 = vadd.f32 1.0, %v1206_v55 }
 0x28e   : > { %v673_v58 = vmul.f32 %v672_v57, %v669_v56 }
 0x290   : > { %v674_v59 = vpack.c.bf16 %v673_v58, %v673_v58 }
 0x292   : > { %1082 = vmatmul.mubr.bf16.vlgmr.msra.gmra.mrb[4].mxu0 %v674_v59 }
 0x365   : > { %v777_v63 = vpop.f32.mrb[4].mxu0 }
 0x366   : > { %v778_v0 = vadd.f32 %v777_v63, %v694_v61  ;;  %v1083_v1 = vpop.f32.mrb[5].mxu0 }
 0x367   : > { %v780_v3 = vpop.f32.mrb[6].mxu0 }
 0x368   : > { %v783_v4 = vadd.f32 %v778_v0, %v553_v41  ;;  %v1084_v5 = vpop.f32.mrb[7].mxu0 }
 0x36a   : > { %v786_v6 = vadd.f32 %v785_v2, %v783_v4 }
 0x36c   : > { %787 = vadd.xlane.f32.xlu0 %v786_v6  ;;  %v789_v7 = vmul.f32 %v786_v6, %v786_v6 }
 0x370   : > { %790 = vadd.xlane.f32.xlu0 %v789_v7 }
 0x3f9   : > { %v788_v8 = vpop.xlane.xlu0 %787 }
 0x3fa   : > { %v792_v9 = vmul.f32 0.0078125, %v788_v8 }
 0x3fc   : > { %v794_v11 = vmul.f32 %v792_v9, %v792_v9  ;;  %v799_v19 = vsub.f32 %v786_v6, %v792_v9 }
 0x3fd   : > { %v791_v10 = vpop.xlane.xlu0 %790 }
 0x3fe   : > { %v793_v12 = vmul.f32 0.0078125, %v791_v10 }
 0x400   : > { %v795_v13 = vsub.f32 %v793_v12, %v794_v11 }
 0x402   : > { %v796_v14 = vmax.f32 %v795_v13, 0.0 }
 0x404   : > { %v797_v15 = vadd.f32 1e-12, %v796_v14 }
 0x406   : > { %1207 = vrsqrt.f32 %v797_v15 }
 0x410   : > { %v1208_v20 = vpop.eup %1207 }
 0x411   : > { %v800_v21 = vmul.f32 %v1208_v20, %v799_v19 }
 0x413   : > { %v805_v23 = vmul.f32 %v804_v18, %v800_v21 }
 0x415   : > { %v810_v24 = vadd.f32 %v809_v22, %v805_v23 }
 0x417   : > { %811 = vst [vmem:[%s374_s12] sm:$0xff] %v810_v24 }
 0x418   : > { %1366 = shalt.err (!%p1363_p10)
}
 0x419   : > { %s1367_s2 = scalar_lea.hbm %s1787_s20, 128  ;;  %s1371_s30 = scalar_lea.hbm %s1838_s7, 256 }
 0x41a   : > { %p1368_p13 = scmp.ne.s32.totalorder %s1787_s20, %s1367_s2  ;;  %p1372_p9 = scmp.lt.u32.totalorder %s1787_s20, %s1838_s7 }
 0x41b   : > { %p1373_p3 = scmp.lt.u32.totalorder %s1371_s30, %s1367_s2  ;;  %p1375_p12 = scmp.lt.u32.totalorder %s1367_s2, %s1787_s20 }
 0x41c   : > { %p1369_p5 = pnand %p1368_p13, %p1864_p1 }
 0x41d   : > { %p1374_p7 = por %p1373_p3, %p1372_p9 }
 0x41e   : > { %p1370_p11 = pneg %p1369_p5 }
 0x41f   : > { %p1376_p2 = por %p1375_p12, %p1374_p7 }
 0x421   : > { %p1377_p4 = pnand %p1376_p2, %p1370_p11 }
 0x423   : > { %1380 = shalt.err (!%p1377_p4)
}
 0x424   : > { %1101 = dma.vmem_to_hbm [thread:$0]  (%p1864_p1), %s1789_s21, 128, %s1787_s20, %s813_s23  }
 0x425 PF: > { %s1865_s8 = sld [smem:[#allocation17_spill]]  ;;  %s838_s13 = sand.u32 1, %s1419_s24  }
 0x426   : > { %p1867_p8 = scmp.ge.s32.totalorder %s1431_s27, 2  ;;  %s839_s12 = scalar_lea.sflag [#allocation4], %s838_s13 }
 0x42b   : > { %p1866_p0 = scmp.ne.s32.totalorder %s1865_s8, 0 }
 0x42d   : > { %p1121_p6 = pnand %p1867_p8, %p1866_p0 }
 0x42f   : > { %1414 = dma.done.wait (!%p1121_p6), %s839_s12, 128  }
 0x430   : > { %1416 = vsyncadd (!%p1121_p6), %s839_s12, 4294967168  ;;  %p24_p10 = scmp.ge.s32.totalorder %s1623_s22, 4   ;;  %s1868_s24 = smov %s1423_s25 }
 0x431   : > { %s1869_s25 = smov %s1427_s26  ;;  %s1870_s26 = smov %s1633_s18 }
 0x432   : > { %s1871_s27 = smov %s1623_s22  ;;  %26 = sbr.rel (!%p24_p10) target bundleno = 11 (0xb), region = 118 }
 0x439   :  { %844 = vsyncpa [#allocation3], 1 }
 0x43a   :  { %846 = vsyncpa [#allocation3 + $0x1], 1 }
 0x43b   :  { %847 = vsyncpa [#allocation6], 1 }
 0x43c   :  { %849 = vsyncpa [#allocation6 + $0x1], 1 }
 0x43d   :  { %850 = vsyncpa [#allocation9], 1 }
 0x43e   :  { %851 = vsyncpa [#allocation4], 1 }
 0x43f   :  { %853 = vsyncpa [#allocation4 + $0x1], 1 }

// kernel: tpu_custom_call.1
= control target key start
LH: loop header
LB: loop body
LE: loop exit
PB: predicated region body
PF: predicated region fallthrough
CT: control target
= control target key end

     0   :  { %s1831_s0 = inlined_call_operand.hbm [shape: bf16[16,256], index: 0, kind: input, shape index: {}]   ;;  %s1832_s1 = inlined_call_operand.hbm [shape: bf16[16,128], index: 1, kind: input, shape index: {}]   ;;  %s1833_s2 = inlined_call_operand.hbm [shape: bf16[256,128], index: 2, kind: input, shape index: {}]   ;;  %s1834_s3 = inlined_call_operand.hbm [shape: bf16[128,128], index: 3, kind: input, shape index: {}]   ;;  %s1835_s4 = inlined_call_operand.hbm [shape: bf16[128,128], index: 4, kind: input, shape index: {}]   ;;  %s1836_s5 = inlined_call_operand.vmem [shape: f32[1,128], index: 5, kind: input, shape index: {}]   ;;  %s1837_s6 = inlined_call_operand.vmem [shape: f32[4,128], index: 6, kind: input, shape index: {}]   ;;  %s1838_s7 = inlined_call_operand.hbm [shape: f32[16,128], index: 7, kind: output, shape index: {}]  }
   0x1   :  { %1844 = sst [smem:[#allocation18_spill]] %s1831_s0 }
   0x2   :  { %1845 = sst [smem:[#allocation19_spill]] %s1833_s2 }
   0x3   :  { %12 = vsyncpa [#allocation3], 0 }
   0x4   :  { %14 = vsyncpa [#allocation3 + $0x1], 0 }
   0x5   :  { %15 = vsyncpa [#allocation6], 0 }
   0x6   :  { %17 = vsyncpa [#allocation6 + $0x1], 0 }
   0x7   :  { %18 = vsyncpa [#allocation9], 0 }
   0x8   :  { %19 = vsyncpa [#allocation4], 0 }
   0x9   :  { %21 = vsyncpa [#allocation4 + $0x1], 0  ;;  %s1483_s24 = smov 0   ;;  %s1485_s25 = smov 0  }
   0xa   :  { %s1487_s26 = smov 0   ;;  %s1489_s27 = smov 0  }
   0xb LB: > { %s1504_s28 = sadd.s32 4294967295, %s1431_s27   ;;  %s947_s29 = sadd.s32 4294967294, %s1431_s27   ;;  %s1431_s27 = sphi %s1489_s27, %s1871_s27   ;;  %s1427_s26 = sphi %s1487_s26, %s1870_s26   ;;  %s1423_s25 = sphi %s1485_s25, %s1869_s25   ;;  %s1419_s24 = sphi %s1483_s24, %s1868_s24  }
   0xc   : > { %p47_p0 = scmp.ne.s32.totalorder %s1423_s25, %s1419_s24  ;;  %p1839_p1 = scmp.eq.s32.totalorder %s1504_s28, 0 }
   0xd   : > { %p208_p3 = scmp.eq.s32.totalorder %s947_s29, 1  ;;  %p948_p5 = scmp.ge.s32.totalorder %s1431_s27, 1 }
   0xe   : > { %p1513_p4 = por %p1839_p1, %p47_p0  ;;  %p215_p7 = scmp.lt.s32.totalorder %s1431_s27, 3 }
   0xf   : > { %p1518_p6 = por %p208_p3, %p47_p0  ;;  %s1433_s10 = smov [#allocation7]  }
  0x10   : > { %s1846_s30 = scalar_select %p1513_p4, 1, 0 }
  0x11   : > { %s1847_s8 = scalar_select %p1518_p6, 1, 0 }
  0x12   : > { %p1523_p8 = pnand %p948_p5, %p215_p7  ;;  %s227_s11 = sshll.u32 %s1433_s10, 4  ;;  %s1527_s11 = int_to_ptr.vmem [resolvable:$true] %s227_s11 }
  0x13   : > { %1848 = sst [smem:[#allocation17_spill]] %s1847_s8  ;;  %s1434_s13 = smov [#allocation8]  }
  0x14   : > { %s1849_s9 = scalar_select %p1523_p8, 1, 0 }
  0x15   : > { %p1103_p9 = pneg %p1523_p8  ;;  %s240_s14 = sshll.u32 %s1434_s13, 4  ;;  %s1538_s14 = int_to_ptr.vmem [resolvable:$true] %s240_s14 }
  0x16   : > { %s1435_s15 = smov [#allocation10]   ;;  %s1851_s2 = sld [smem:[#allocation19_spill]] }
  0x17   : > { %p1534_p11 = pnand %p1103_p9, %p1839_p1  ;;  %s1540_s16 = sshll.u32 %s1435_s15, 4  ;;  %s254_s16 = int_to_ptr.vmem [resolvable:$true] %s1540_s16 }
  0x19   : > { %p1550_p13 = pneg %p1534_p11 }
  0x1c   : > { %s1209_s19 = scalar_lea.hbm %s1851_s2, 2048 }
  0x1d   : > { %p1210_p12 = scmp.ne.s32.totalorder %s1851_s2, %s1209_s19  ;;  %p1216_p5 = scmp.lt.u32.totalorder %s1209_s19, %s1851_s2 }
  0x1f   : > { %p1212_p0 = pnand %p1550_p13, %p1210_p12 }
  0x21   : > { %p1213_p3 = pneg %p1212_p0 }
  0x23   : > { %p1218_p7 = pnand %p1216_p5, %p1213_p3 }
  0x25   : > { %1221 = shalt.err (!%p1218_p7)
}
  0x26   : > { %s1222_s10 = scalar_lea.vmem %s1527_s11, 2048  ;;  %p1230_p2 = scmp.lt.s32.totalorder %s1527_s11, %s1527_s11 }
  0x27   : > { %p1223_p9 = scmp.ne.s32.totalorder %s1527_s11, %s1222_s10  ;;  %p1231_p6 = scmp.lt.s32.totalorder %s1222_s10, %s1222_s10 }
  0x29   : > { %p1225_p10 = pnand %p1223_p9, %p1550_p13  ;;  %p1232_p12 = por %p1231_p6, %p1230_p2 }
  0x2b   : > { %p1226_p1 = pneg %p1225_p10 }
  0x2d   : > { %p1233_p0 = pnand %p1232_p12, %p1226_p1 }
  0x2f   : > { %1236 = shalt.err (!%p1233_p0)
}
  0x30   : > { %s1436_s13 = smov 64   ;;  %s1437_s15 = smov 4  }
  0x31   : > { %1106 = dma.hbm_to_vmem [thread:$0]  (!%p1534_p11), %s1851_s2, 2048, %s1527_s11, [#allocation6], %s1436_s13, %s1436_s13, %s1437_s15  }
  0x32   : > { %s1237_s21 = scalar_lea.hbm %s1834_s3, 1024 }
  0x33   : > { %p1238_p1 = scmp.ne.s32.totalorder %s1834_s3, %s1237_s21  ;;  %p1244_p10 = scmp.lt.u32.totalorder %s1237_s21, %s1834_s3 }
  0x35   : > { %p1240_p2 = pnand %p1238_p1, %p1550_p13 }
  0x37   : > { %p1241_p6 = pneg %p1240_p2 }
  0x39   : > { %p1246_p3 = pnand %p1244_p10, %p1241_p6 }
  0x3b   : > { %1249 = shalt.err (!%p1246_p3)
}
  0x3c   : > { %s1250_s11 = scalar_lea.vmem %s1538_s14, 1024  ;;  %p1258_p12 = scmp.lt.s32.totalorder %s1538_s14, %s1538_s14 }
  0x3d   : > { %p1251_p5 = scmp.ne.s32.totalorder %s1538_s14, %s1250_s11  ;;  %p1259_p0 = scmp.lt.s32.totalorder %s1250_s11, %s1250_s11 }
  0x3f   : > { %p1253_p7 = pnand %p1251_p5, %p1550_p13  ;;  %p1260_p1 = por %p1259_p0, %p1258_p12 }
  0x41   : > { %p1254_p9 = pneg %p1253_p7 }
  0x43   : > { %p1261_p2 = pnand %p1260_p1, %p1254_p9 }
  0x45   : > { %1264 = shalt.err (!%p1261_p2)
}
  0x46   : > { %1109 = dma.hbm_to_vmem [thread:$0]  (!%p1534_p11), %s1834_s3, 1024, %s1538_s14, [#allocation9], %s1436_s13, %s1436_s13, %s1437_s15  }
  0x47   : > { %s1265_s20 = scalar_lea.hbm %s1835_s4, 1024 }
  0x48   : > { %p1266_p6 = scmp.ne.s32.totalorder %s1835_s4, %s1265_s20  ;;  %p1272_p5 = scmp.lt.u32.totalorder %s1265_s20, %s1835_s4 }
  0x4a   : > { %p1268_p10 = pnand %p1266_p6, %p1550_p13 }
  0x4c   : > { %p1269_p3 = pneg %p1268_p10 }
  0x4e   : > { %p1274_p7 = pnand %p1272_p5, %p1269_p3 }
  0x50   : > { %1277 = shalt.err (!%p1274_p7)
}
  0x51   : > { %s1278_s11 = scalar_lea.vmem %s254_s16, 1024  ;;  %p1286_p1 = scmp.lt.s32.totalorder %s254_s16, %s254_s16 }
  0x52   : > { %p1279_p9 = scmp.ne.s32.totalorder %s254_s16, %s1278_s11  ;;  %p1287_p2 = scmp.lt.s32.totalorder %s1278_s11, %s1278_s11 }
  0x54   : > { %p1281_p12 = pnand %p1279_p9, %p1550_p13  ;;  %p1288_p4 = por %p1287_p2, %p1286_p1 }
  0x56   : > { %p1282_p0 = pneg %p1281_p12 }
  0x58   : > { %p1289_p8 = pnand %p1288_p4, %p1282_p0 }
  0x5a   : > { %1292 = shalt.err (!%p1289_p8)
}
  0x5b   : > { %1112 = dma.hbm_to_vmem [thread:$0]  (!%p1534_p11), %s1835_s4, 1024, %s254_s16, [#allocation9], %s1436_s13, %s1436_s13, %s1437_s15  }
  0x5c   : > { %s1623_s22 = sadd.s32 1, %s1431_s27   ;;  %s34_s17 = sadd.s32 1, %s1427_s26 }
  0x5d   : > { %s31_s12 = ssub.s32 %s1431_s27, %s1623_s22  ;;  %p41_p8 = scmp.ne.s32.totalorder %s1427_s26, %s1423_s25 }
  0x5e   : > { %p32_p4 = scmp.eq.s32.totalorder %s31_s12, 0  ;;  %p42_p13 = scmp.eq.s32.totalorder %s1431_s27, 0 }
  0x5f   : > { %p1127_p6 = scmp.lt.s32.totalorder %s1431_s27, 2  ;;  %p1853_p3 = scmp.eq.s32.totalorder %s1504_s28, 1 }
  0x60   : > { %s1633_s18 = scalar_select %p32_p4, %s1427_s26, %s34_s17  }
  0x61   : > { %p43_p10 = por %p42_p13, %p41_p8  ;;  %p1637_p5 = por %p1853_p3, %p41_p8 }
  0x62   : > { %s1642_s20 = sand.u32 1, %s1427_s26   ;;  %s1004_s16 = sshll.u32 %s1431_s27, 7 }
  0x63   : > { %s1854_s19 = scalar_select %p1637_p5, 1, 0 }
  0x64   : > { %s953_s13 = sshll.u32 %s1642_s20, 3  ;;  %s1855_s0 = sld [smem:[#allocation18_spill]] }
  0x65   : > { %s277_s29 = scalar_lea.vmem [#allocation2], %s953_s13  ;;  %p1651_p11 = pnand %p1127_p6, %p43_p10 }
  0x66   : > { %s285_s10 = sshll.u32 %s277_s29, 4  ;;  %s274_s8 = scalar_lea.sflag [#allocation3], %s1642_s20  ;;  %s1655_s10 = int_to_ptr.vmem [resolvable:$true] %s285_s10 }
  0x67   : > { %p1295_p9 = pneg %p1651_p11 }
  0x6a   : > { %s1649_s23 = scalar_lea.hbm %s1855_s0, %s1004_s16  ;;  %s1298_s13 = scalar_lea.hbm %s1855_s0, 256 }
  0x6b   : > { %s1293_s12 = scalar_lea.hbm %s1649_s23, 128  ;;  %p1299_p1 = scmp.lt.u32.totalorder %s1649_s23, %s1855_s0 }
  0x6c   : > { %p1294_p7 = scmp.ne.s32.totalorder %s1649_s23, %s1293_s12  ;;  %p1300_p2 = scmp.lt.u32.totalorder %s1298_s13, %s1293_s12 }
  0x6d   : > { %p1302_p8 = scmp.lt.u32.totalorder %s1293_s12, %s1649_s23 }
  0x6e   : > { %p1296_p12 = pnand %p1295_p9, %p1294_p7  ;;  %p1301_p4 = por %p1300_p2, %p1299_p1 }
  0x70   : > { %p1297_p0 = pneg %p1296_p12  ;;  %p1303_p13 = por %p1302_p8, %p1301_p4 }
  0x72   : > { %p1304_p6 = pnand %p1303_p13, %p1297_p0 }
  0x74   : > { %1307 = shalt.err (!%p1304_p6)
}
  0x75   : > { %s1308_s29 = scalar_lea.vmem %s1655_s10, 128  ;;  %s1438_s17 = smov [#allocation2]  }
  0x76   : > { %p1309_p10 = scmp.ne.s32.totalorder %s1655_s10, %s1308_s29  ;;  %s1313_s16 = sshll.u32 %s1438_s17, 4  ;;  %s1314_s16 = int_to_ptr.vmem [resolvable:$false] %s1313_s16 }
  0x77   : > { %s1315_s15 = scalar_lea.vmem %s1314_s16, 256  ;;  %p1316_p12 = scmp.lt.s32.totalorder %s1655_s10, %s1314_s16 }
  0x78   : > { %p1311_p3 = pnand %p1309_p10, %p1295_p9  ;;  %p1317_p1 = scmp.lt.s32.totalorder %s1315_s15, %s1308_s29 }
  0x7a   : > { %p1312_p7 = pneg %p1311_p3  ;;  %p1318_p2 = por %p1317_p1, %p1316_p12 }
  0x7c   : > { %p1319_p4 = pnand %p1318_p2, %p1312_p7 }
  0x7e   : > { %1322 = shalt.err (!%p1319_p4)
}
  0x7f   : > { %1116 = dma.hbm_to_vmem [thread:$0]  (!%p1651_p11), %s1649_s23, 128, %s1655_s10, %s274_s8  }
  0x80   : > { %s956_s12 = sshll.u32 %s1642_s20, 2  ;;  %s957_s13 = sshll.u32 %s1431_s27, 6 }
  0x81   : > { %s1689_s14 = scalar_lea.hbm %s1832_s1, %s957_s13  ;;  %s296_s29 = scalar_lea.vmem [#allocation5], %s956_s12 }
  0x82   : > { %s303_s16 = sshll.u32 %s296_s29, 4  ;;  %s1857_s15 = sand.u32 1, %s1431_s27   ;;  %s304_s16 = int_to_ptr.vmem [resolvable:$true] %s303_s16 }
  0x83   : > { %s293_s0 = scalar_lea.sflag [#allocation6], %s1857_s15  ;;  %s1323_s2 = scalar_lea.hbm %s1689_s14, 64 }
  0x84   : > { %p1324_p0 = scmp.ne.s32.totalorder %s1689_s14, %s1323_s2  ;;  %s1328_s10 = scalar_lea.hbm %s1832_s1, 128 }
  0x85   : > { %p1329_p6 = scmp.lt.u32.totalorder %s1689_s14, %s1832_s1  ;;  %p1330_p10 = scmp.lt.u32.totalorder %s1328_s10, %s1323_s2 }
  0x86   : > { %p1326_p8 = pnand %p1324_p0, %p1295_p9  ;;  %p1332_p7 = scmp.lt.u32.totalorder %s1323_s2, %s1689_s14 }
  0x87   : > { %p1331_p3 = por %p1330_p10, %p1329_p6 }
  0x88   : > { %p1327_p13 = pneg %p1326_p8 }
  0x89   : > { %p1333_p12 = por %p1332_p7, %p1331_p3 }
  0x8b   : > { %p1334_p1 = pnand %p1333_p12, %p1327_p13 }
  0x8d   : > { %1337 = shalt.err (!%p1334_p1)
}
  0x8e   : > { %s1338_s12 = scalar_lea.vmem %s304_s16, 64  ;;  %s1439_s21 = smov [#allocation5]  }
  0x8f   : > { %p1339_p2 = scmp.ne.s32.totalorder %s304_s16, %s1338_s12  ;;  %s1343_s17 = sshll.u32 %s1439_s21, 4  ;;  %s1344_s17 = int_to_ptr.vmem [resolvable:$false] %s1343_s17 }
  0x90   : > { %s1345_s29 = scalar_lea.vmem %s1344_s17, 128  ;;  %p1346_p8 = scmp.lt.s32.totalorder %s304_s16, %s1344_s17 }
  0x91   : > { %p1341_p4 = pnand %p1339_p2, %p1295_p9  ;;  %p1347_p5 = scmp.lt.s32.totalorder %s1345_s29, %s1338_s12 }
  0x93   : > { %p1342_p0 = pneg %p1341_p4  ;;  %p1348_p6 = por %p1347_p5, %p1346_p8 }
  0x95   : > { %p1349_p10 = pnand %p1348_p6, %p1342_p0 }
  0x97   : > { %1352 = shalt.err (!%p1349_p10)
}
  0x98   : > { %1119 = dma.hbm_to_vmem [thread:$0]  (!%p1651_p11), %s1689_s14, 64, %s304_s16, %s293_s0  }
  0x99   : > { %p1858_p13 = scmp.ne.s32.totalorder %s1849_s9, 0 }
  0x9a   : > { %s1715_s2 = sand.u32 (!%p1858_p13), 1, %s1423_s25   ;;  %p1859_p5 = scmp.ne.s32.totalorder (!%p1858_p13), %s1846_s30, 0 }
  0x9b   : > { %312 = sbr.rel (%p1858_p13) target bundleno = 1061 (0x425), region = 48  ;;  %s959_s15 = sshll.u32 (!%p1858_p13), %s1715_s2, 3 }
  0x9c   : > { %s315_s20 = scalar_lea.sflag (!%p1858_p13), [#allocation3], %s1715_s2  ;;  %s1721_s23 = scalar_lea.vmem (!%p1858_p13), [#allocation2], %s959_s15 }
  0xa2   : > { %1398 = dma.done.wait (%p1859_p5), %s315_s20, 128  }
  0xa3   : > { %1400 = vsyncadd (%p1859_p5), %s315_s20, 4294967168  ;;  %s323_s0 = sand.u32 1, %s1504_s28   ;;  %s960_s9 = sshll.u32 %s1715_s2, 2 }
  0xa4   : > { %s324_s11 = scalar_lea.sflag [#allocation6], %s323_s0  ;;  %s1729_s14 = scalar_lea.vmem [#allocation5], %s960_s9 }
  0xa5   : > { %1402 = dma.done.wait (%p1859_p5), %s324_s11, 64  }
  0xa6   : > { %1404 = vsyncadd (%p1859_p5), %s324_s11, 4294967232  ;;  %p1860_p11 = scmp.eq.s32.totalorder %s1504_s28, 0 }
  0xa8   : > { %1406 = dma.done.wait (%p1860_p11), [#allocation6], 2048   ;;  %p1861_p9 = pmov %p1860_p11 }
  0xaa   : > { %1408 = vsyncadd (%p1861_p9), [#allocation6], 4294965248  ;;  %p1862_p3 = pmov %p1861_p9 }
  0xac   : > { %1410 = dma.done.wait (%p1862_p3), [#allocation9], 2048   ;;  %p1863_p7 = pmov %p1862_p3 }
  0xad   : > { %v1440_v0 = vmov 0.0   ;;  %v1171_v1 = vld [vmem:[#allocation7 + $0x40] sm:$0xff]   ;;  %v1173_v3 = vld [vmem:[#allocation7 + $0x48] sm:$0xff]   ;;  %v1175_v5 = vld [vmem:[#allocation7 + $0x50] sm:$0xff]   ;;  %vm1441_vm0 = vmmov 0   ;;  %v411_v31 = vlaneseq  ;;  %s1001_s13 = sshll.u32 %s1504_s28, 7 }
  0xae   : > { %1412 = vsyncadd (%p1863_p7), [#allocation9], 4294965248  ;;  %1045 = vmatprep.subr.bf16.mxu1 %v1440_v0  ;;  %v1172_v2 = vld [vmem:[#allocation7] sm:$0xff]   ;;  %1005 = vmatprep.subr.bf16.mxu0 %v1171_v1  ;;  %v1174_v4 = vld [vmem:[#allocation7 + $0x8] sm:$0xff]   ;;  %s374_s12 = scalar_lea.vmem [#allocation11], %s959_s15  ;;  %s1787_s20 = scalar_lea.hbm %s1838_s7, %s1001_s13 }
  0xaf   : > { %1006 = vmatpush3.bf16.msra.mxu0 %v1172_v2  ;;  %v1176_v6 = vld [vmem:[#allocation7 + $0x10] sm:$0xff]   ;;  %v1177_v7 = vld [vmem:[#allocation7 + $0x58] sm:$0xff]   ;;  %v1179_v9 = vld [vmem:[#allocation7 + $0x60] sm:$0xff]   ;;  %1061 = vmatprep.mubr.msk.bf16.mxu1 %vm1441_vm0, %v1440_v0  ;;  %v1758_v32 = vshrl.u32 %v411_v31, 7  ;;  %s826_s21 = sshll.u32 %s374_s12, 4  ;;  %p1864_p1 = scmp.ne.s32.totalorder %s1854_s19, 0  ;;  %s1789_s21 = int_to_ptr.vmem [resolvable:$true] %s826_s21 }
  0xb0   : > { %1007 = vmatprep.subr.bf16.mxu0 %v1173_v3  ;;  %v1178_v8 = vld [vmem:[#allocation7 + $0x18] sm:$0xff]   ;;  %v1180_v10 = vld [vmem:[#allocation7 + $0x20] sm:$0xff]   ;;  %v1181_v11 = vld [vmem:[#allocation7 + $0x68] sm:$0xff]   ;;  %s1353_s0 = scalar_lea.vmem %s1789_s21, 128  ;;  %s1442_s28 = smov [#allocation11]  }
  0xb1   : > { %v378_v12 = vld [vmem:[%s1721_s23] sm:$0xff]  ;;  %v1189_v14 = vld [vmem:[#allocation8] sm:$0xff]   ;;  %v1185_v19 = vld [vmem:[#allocation7 + $0x78] sm:$0xff]   ;;  %v413_v33 = vsub.s32 0, %v1758_v32  ;;  %v693_v60 = vsub.s32 1, %v1758_v32  ;;  %s813_s23 = scalar_lea.sflag [#allocation4], %s1715_s2  ;;  %p1354_p12 = scmp.ne.s32.totalorder %s1789_s21, %s1353_s0 }
  0xb2   : > { %v966_v13 = vcombine.high %v378_v12, %v378_v12  ;;  %v1182_v15 = vld [vmem:[#allocation7 + $0x28] sm:$0xff]   ;;  %v1183_v16 = vld [vmem:[#allocation7 + $0x70] sm:$0xff]   ;;  %1046 = vmatpush3.bf16.msra.mxu1 %v1189_v14  ;;  %v1186_v21 = vld [vmem:[#allocation7 + $0x38] sm:$0xff]   ;;  %v965_v23 = vcombine.low %v378_v12, %v378_v12  ;;  %s1357_s15 = sshll.u32 %s1442_s28, 4  ;;  %s1358_s15 = int_to_ptr.vmem [resolvable:$false] %s1357_s15 }
  0xb3   : > { %1008 = vmatpush3.bf16.msra.mxu0 %v1174_v4  ;;  %v1190_v17 = vld [vmem:[#allocation8 + $0x8] sm:$0xff]   ;;  %v1184_v18 = vld [vmem:[#allocation7 + $0x30] sm:$0xff]   ;;  %1047 = vmatprep.subr.bf16.mxu1 %v1440_v0  ;;  %v1192_v22 = vld [vmem:[#allocation8 + $0x18] sm:$0xff]   ;;  %p1355_p2 = pnand %p1354_p12, %p1864_p1  ;;  %s1359_s9 = scalar_lea.vmem %s1358_s15, 256 }
  0xb4   : > { %1009 = vmatprep.subr.bf16.mxu0 %v1175_v5  ;;  %550 = vmatprep.mubr.bf16.mxu0 %v966_v13  ;;  %v1191_v20 = vld [vmem:[#allocation8 + $0x10] sm:$0xff]   ;;  %v1193_v24 = vld [vmem:[#allocation8 + $0x20] sm:$0xff]   ;;  %v1194_v25 = vld [vmem:[#allocation8 + $0x28] sm:$0xff]   ;;  %p1360_p0 = scmp.lt.s32.totalorder %s1789_s21, %s1358_s15  ;;  %p1361_p8 = scmp.lt.s32.totalorder %s1359_s9, %s1353_s0 }
  0xb5   : > { %v1195_v26 = vld [vmem:[#allocation8 + $0x30] sm:$0xff]   ;;  %v1196_v27 = vld [vmem:[#allocation8 + $0x38] sm:$0xff]   ;;  %v1197_v28 = vld [vmem:[#allocation10] sm:$0xff]   ;;  %p1356_p4 = pneg %p1355_p2 }
  0xb6   : > { %1048 = vmatpush3.bf16.msra.mxu1 %v1190_v17  ;;  %v1198_v29 = vld [vmem:[#allocation10 + $0x8] sm:$0xff]   ;;  %v1199_v30 = vld [vmem:[#allocation10 + $0x10] sm:$0xff]   ;;  %v1200_v43 = vld [vmem:[#allocation10 + $0x18] sm:$0xff]   ;;  %v808_v17 = vsub.s32 3, %v1758_v32  ;;  %p1362_p6 = por %p1361_p8, %p1360_p0 }
  0xb7   : > { %1010 = vmatpush3.bf16.msra.mxu0 %v1176_v6  ;;  %1049 = vmatprep.subr.bf16.mxu1 %v1440_v0  ;;  %v1764_v34 = vld [vmem:[%s1837_s6] sm:$0xf]  ;;  %v1201_v44 = vld [vmem:[#allocation10 + $0x20] sm:$0xff]   ;;  %v1203_v46 = vld [vmem:[#allocation10 + $0x30] sm:$0xff]  }
  0xb8   : > { %1011 = vmatprep.subr.bf16.mxu0 %v1177_v7  ;;  %v414_v36 = vrot.slane %v1764_v34, %v413_v33  ;;  %v1202_v45 = vld [vmem:[#allocation10 + $0x28] sm:$0xff]   ;;  %v1204_v47 = vld [vmem:[#allocation10 + $0x38] sm:$0xff]   ;;  %v694_v61 = vrot.slane %v1764_v34, %v693_v60  ;;  %p1363_p10 = pnand %p1362_p6, %p1356_p4 }
  0xb9   : > { %v983_v48 = vld [vmem:[%s1836_s5] ss:$0 sm:$0xff]  ;;  %v784_v62 = vld [vmem:[%s1729_s14] sm:$0xf] }
  0xba   : > { %1050 = vmatpush3.bf16.msra.mxu1 %v1191_v20  ;;  %v785_v2 = vunpack.c.l.bf16 %v784_v62 }
  0xbb   : > { %1012 = vmatpush3.bf16.msra.mxu0 %v1178_v8  ;;  %1051 = vmatprep.subr.bf16.mxu1 %v1440_v0 }
  0xbc   : > { %1013 = vmatprep.subr.bf16.mxu0 %v1179_v9 }
  0xbe   : > { %1052 = vmatpush3.bf16.msra.mxu1 %v1192_v22  ;;  %v809_v22 = vrot.slane %v1764_v34, %v808_v17 }
  0xbf   : > { %1014 = vmatpush3.bf16.msra.mxu0 %v1180_v10  ;;  %1053 = vmatprep.subr.bf16.mxu1 %v1440_v0 }
  0xc0   : > { %1015 = vmatprep.subr.bf16.mxu0 %v1181_v11 }
  0xc2   : > { %1054 = vmatpush3.bf16.msra.mxu1 %v1193_v24 }
  0xc3   : > { %1016 = vmatpush3.bf16.msra.mxu0 %v1182_v15  ;;  %1055 = vmatprep.subr.bf16.mxu1 %v1440_v0 }
  0xc4   : > { %1017 = vmatprep.subr.bf16.mxu0 %v1183_v16  ;;  %v803_v16 = vsub.s32 2, %v1758_v32 }
  0xc6   : > { %1056 = vmatpush3.bf16.msra.mxu1 %v1194_v25 }
  0xc7   : > { %1018 = vmatpush3.bf16.msra.mxu0 %v1184_v18  ;;  %1057 = vmatprep.subr.bf16.mxu1 %v1440_v0  ;;  %v804_v18 = vrot.slane %v1764_v34, %v803_v16 }
  0xc8   : > { %1019 = vmatprep.subr.bf16.mxu0 %v1185_v19 }
  0xca   : > { %1058 = vmatpush3.bf16.msra.mxu1 %v1195_v26 }
  0xcb   : > { %1020 = vmatpush3.bf16.msra.mxu0 %v1186_v21  ;;  %1059 = vmatprep.subr.bf16.mxu1 %v1440_v0 }
  0xcc   : > { %1065 = vmatprep.subr.bf16.mxu0 %v1440_v0 }
  0xce   : > { %551 = vmatmul.mubr.bf16.vlgmr.msra.gmra.mrb[0].mxu0 %v965_v23  ;;  %1060 = vmatpush3.bf16.msra.mxu1 %v1196_v27 }
  0xcf   : > { %1081 = vmatprep.mubr.msk.bf16.mxu0 %vm1441_vm0, %v1440_v0  ;;  %1066 = vmatpush3.bf16.msra.mxu0 %v1197_v28 }
  0xd0   : > { %1067 = vmatprep.subr.bf16.mxu0 %v1440_v0 }
  0xd3   : > { %1068 = vmatpush3.bf16.msra.mxu0 %v1198_v29 }
  0xd4   : > { %1069 = vmatprep.subr.bf16.mxu0 %v1440_v0 }
  0xd7   : > { %1070 = vmatpush3.bf16.msra.mxu0 %v1199_v30 }
  0xd8   : > { %1071 = vmatprep.subr.bf16.mxu0 %v1440_v0 }
  0xdb   : > { %1072 = vmatpush3.bf16.msra.mxu0 %v1200_v43 }
  0xdc   : > { %1073 = vmatprep.subr.bf16.mxu0 %v1440_v0 }
  0xdf   : > { %1074 = vmatpush3.bf16.msra.mxu0 %v1201_v44 }
  0xe0   : > { %1075 = vmatprep.subr.bf16.mxu0 %v1440_v0 }
  0xe3   : > { %1076 = vmatpush3.bf16.msra.mxu0 %v1202_v45 }
  0xe4   : > { %1077 = vmatprep.subr.bf16.mxu0 %v1440_v0 }
  0xe7   : > { %1078 = vmatpush3.bf16.msra.mxu0 %v1203_v46 }
  0xe8   : > { %1079 = vmatprep.subr.bf16.mxu0 %v1440_v0 }
  0xeb   : > { %1080 = vmatpush3.bf16.msra.mxu0 %v1204_v47 }
 0x1a1   : > { %v1021_v35 = vpop.f32.mrb[0].mxu0 }
 0x1a2   : > { %v1022_v37 = vpop.f32.mrb[1].mxu0 }
 0x1a3   : > { %v1023_v38 = vadd.f32 %v1022_v37, %v1021_v35  ;;  %v1024_v39 = vpop.f32.mrb[2].mxu0 }
 0x1a4   : > { %v1025_v40 = vpop.f32.mrb[3].mxu0 }
 0x1a5   : > { %v553_v41 = vadd.f32 %v1023_v38, %v414_v36 }
 0x1a7   : > { %v558_v42 = vpack.c.bf16 %v553_v41, %v553_v41 }
 0x1a9   : > { %1062 = vmatmul.mubr.bf16.vlgmr.msra.gmra.mrb[0].mxu1 %v558_v42 }
 0x27c   : > { %v663_v49 = vpop.f32.mrb[0].mxu1 }
 0x27d   : > { %v664_v50 = vadd.f32 %v983_v48, %v663_v49  ;;  %v1063_v51 = vpop.f32.mrb[1].mxu1 }
 0x27e   : > { %v666_v52 = vpop.f32.mrb[2].mxu1 }
 0x27f   : > { %v670_v53 = vmul.f32 0.70710677, %v664_v50  ;;  %v1064_v54 = vpop.f32.mrb[3].mxu1  ;;  %v669_v56 = vmul.f32 0.5, %v664_v50 }
 0x281   : > { %1205 = verf.f32 %v670_v53 }
 0x28b   : > { %v1206_v55 = vpop.eup %1205 }
 0x28c   : > { %v672_v57 = vadd.f32 1.0, %v1206_v55 }
 0x28e   : > { %v673_v58 = vmul.f32 %v672_v57, %v669_v56 }
 0x290   : > { %v674_v59 = vpack.c.bf16 %v673_v58, %v673_v58 }
 0x292   : > { %1082 = vmatmul.mubr.bf16.vlgmr.msra.gmra.mrb[4].mxu0 %v674_v59 }
 0x365   : > { %v777_v63 = vpop.f32.mrb[4].mxu0 }
 0x366   : > { %v778_v0 = vadd.f32 %v777_v63, %v694_v61  ;;  %v1083_v1 = vpop.f32.mrb[5].mxu0 }
 0x367   : > { %v780_v3 = vpop.f32.mrb[6].mxu0 }
 0x368   : > { %v783_v4 = vadd.f32 %v778_v0, %v553_v41  ;;  %v1084_v5 = vpop.f32.mrb[7].mxu0 }
 0x36a   : > { %v786_v6 = vadd.f32 %v785_v2, %v783_v4 }
 0x36c   : > { %787 = vadd.xlane.f32.xlu0 %v786_v6  ;;  %v789_v7 = vmul.f32 %v786_v6, %v786_v6 }
 0x370   : > { %790 = vadd.xlane.f32.xlu0 %v789_v7 }
 0x3f9   : > { %v788_v8 = vpop.xlane.xlu0 %787 }
 0x3fa   : > { %v792_v9 = vmul.f32 0.0078125, %v788_v8 }
 0x3fc   : > { %v794_v11 = vmul.f32 %v792_v9, %v792_v9  ;;  %v799_v19 = vsub.f32 %v786_v6, %v792_v9 }
 0x3fd   : > { %v791_v10 = vpop.xlane.xlu0 %790 }
 0x3fe   : > { %v793_v12 = vmul.f32 0.0078125, %v791_v10 }
 0x400   : > { %v795_v13 = vsub.f32 %v793_v12, %v794_v11 }
 0x402   : > { %v796_v14 = vmax.f32 %v795_v13, 0.0 }
 0x404   : > { %v797_v15 = vadd.f32 1e-12, %v796_v14 }
 0x406   : > { %1207 = vrsqrt.f32 %v797_v15 }
 0x410   : > { %v1208_v20 = vpop.eup %1207 }
 0x411   : > { %v800_v21 = vmul.f32 %v1208_v20, %v799_v19 }
 0x413   : > { %v805_v23 = vmul.f32 %v804_v18, %v800_v21 }
 0x415   : > { %v810_v24 = vadd.f32 %v809_v22, %v805_v23 }
 0x417   : > { %811 = vst [vmem:[%s374_s12] sm:$0xff] %v810_v24 }
 0x418   : > { %1366 = shalt.err (!%p1363_p10)
}
 0x419   : > { %s1367_s2 = scalar_lea.hbm %s1787_s20, 128  ;;  %s1371_s30 = scalar_lea.hbm %s1838_s7, 256 }
 0x41a   : > { %p1368_p13 = scmp.ne.s32.totalorder %s1787_s20, %s1367_s2  ;;  %p1372_p9 = scmp.lt.u32.totalorder %s1787_s20, %s1838_s7 }
 0x41b   : > { %p1373_p3 = scmp.lt.u32.totalorder %s1371_s30, %s1367_s2  ;;  %p1375_p12 = scmp.lt.u32.totalorder %s1367_s2, %s1787_s20 }
 0x41c   : > { %p1369_p5 = pnand %p1368_p13, %p1864_p1 }
 0x41d   : > { %p1374_p7 = por %p1373_p3, %p1372_p9 }
 0x41e   : > { %p1370_p11 = pneg %p1369_p5 }
 0x41f   : > { %p1376_p2 = por %p1375_p12, %p1374_p7 }
 0x421   : > { %p1377_p4 = pnand %p1376_p2, %p1370_p11 }
 0x423   : > { %1380 = shalt.err (!%p1377_p4)
}
 0x424   : > { %1101 = dma.vmem_to_hbm [thread:$0]  (%p1864_p1), %s1789_s21, 128, %s1787_s20, %s813_s23  }
 0x425 PF: > { %s1865_s8 = sld [smem:[#allocation17_spill]]  ;;  %s838_s13 = sand.u32 1, %s1419_s24  }
 0x426   : > { %p1867_p8 = scmp.ge.s32.totalorder %s1431_s27, 2  ;;  %s839_s12 = scalar_lea.sflag [#allocation4], %s838_s13 }
 0x42b   : > { %p1866_p0 = scmp.ne.s32.totalorder %s1865_s8, 0 }
 0x42d   : > { %p1121_p6 = pnand %p1867_p8, %p1866_p0 }
 0x42f   : > { %1414 = dma.done.wait (!%p1121_p6), %s839_s12, 128  }
 0x430   : > { %1416 = vsyncadd (!%p1121_p6), %s839_s12, 4294967168  ;;  %p24_p10 = scmp.ge.s32.totalorder %s1623_s22, 4   ;;  %s1868_s24 = smov %s1423_s25 }
 0x431   : > { %s1869_s25 = smov %s1427_s26  ;;  %s1870_s26 = smov %s1633_s18 }
 0x432   : > { %s1871_s27 = smov %s1623_s22  ;;  %26 = sbr.rel (!%p24_p10) target bundleno = 11 (0xb), region = 118 }
 0x439   :  { %844 = vsyncpa [#allocation3], 1 }
 0x43a   :  { %846 = vsyncpa [#allocation3 + $0x1], 1 }
 0x43b   :  { %847 = vsyncpa [#allocation6], 1 }
 0x43c   :  { %849 = vsyncpa [#allocation6 + $0x1], 1 }
 0x43d   :  { %850 = vsyncpa [#allocation9], 1 }
 0x43e   :  { %851 = vsyncpa [#allocation4], 1 }
 0x43f   :  { %853 = vsyncpa [#allocation4 + $0x1], 1 }

</bundles_post_ra>
